<compile_context>
chip_gen: v5e
topology: v5e:2x2
jax: 0.10.0
libtpu: 0.0.40
codegen_flags: <defaults>
</compile_context>

<pallas_src>
import jax
import jax.numpy as jnp
from jax.experimental import pallas as pl
from jax.experimental.pallas import tpu as pltpu


def _abs_pe3d_kernel(x_ref, w1_ref, b1_ref, w2_ref, b2_ref, o_ref):
    # x_ref : (TM, C_in)  point coordinates for this tile
    # w1_ref: (C_in, E)   conv1 weight^T with BN scale folded in
    # b1_ref: (1, E)      conv1 bias with BN shift folded in
    # w2_ref: (E, E)      conv2 weight^T
    # b2_ref: (1, E)      conv2 bias
    # o_ref : (TM, E)
    x = x_ref[...]
    w1 = w1_ref[...]
    c_in = w1_ref.shape[0]                               # static (3)

    # conv1x1 + folded BN as C_in broadcast FMAs (VPU); avoids a degenerate
    # K=3 MXU matmul. Static unroll -> LLO can interleave with the MXU work.
    h = b1_ref[...]                                      # (1, E) -> broadcasts
    for c in range(c_in):                                # static unroll (3 iters)
        h = h + x[:, c:c + 1] * w1[c:c + 1, :]           # (TM,1)*(1,E) -> (TM,E)
    h = jnp.maximum(h, 0.0)                              # ReLU

    # conv1x1 #2 on the MXU, f32 accumulate, lane-dense (TM, E) store.
    o_ref[...] = (
        jnp.dot(h, w2_ref[...], preferred_element_type=jnp.float32) + b2_ref[...]
    ).astype(o_ref.dtype)


def learned_absolute_position_encoding_3d(xyz, params, *, eps=1e-5, tm=512):
    """Pallas implementation of LearnedAbsolutePositionEncoding3D.forward (eval mode).

    xyz:    (B, N, C_in) float coordinates (C_in == 3 for the module).
    params: dict with conv1_w (E, C_in), conv1_b (E,), bn_w/bn_b/bn_mean/bn_var (E,),
            conv2_w (E, E), conv2_b (E,).
    returns (B, N, E) float32.
    """
    B, N, C_in = xyz.shape
    w1 = params["conv1_w"]
    b1 = params["conv1_b"]
    gamma, beta = params["bn_w"], params["bn_b"]
    mean, var = params["bn_mean"], params["bn_var"]
    w2 = params["conv2_w"]
    b2 = params["conv2_b"]
    E = w1.shape[0]

    # TODO(synk): training-mode BatchNorm (batch statistics over B*N) is not computed
    # in-kernel; inference-mode running stats are folded into conv1 below.
    scale = gamma / jnp.sqrt(var + eps)                        # (E,)
    w1t = (w1 * scale[:, None]).T.astype(jnp.float32)          # (C_in, E)
    b1f = ((b1 - mean) * scale + beta).reshape(1, E).astype(jnp.float32)
    w2t = w2.T.astype(jnp.float32)                             # (E, E)
    b2r = b2.reshape(1, E).astype(jnp.float32)

    # Flatten points to rows and tile. TM is a sublane dim (second-to-last of every
    # tiled block), so a multiple of 8 suffices; 512 amortizes the ~0.35us per-step
    # overhead while keeping the double-buffered footprint (~0.5 MiB of output tiles
    # plus resident weights) far below even v7x's scoped-VMEM default.
    M = B * N
    tm = max(8, min(tm, M))
    tm -= tm % 8
    # Keep at least 2 grid steps when possible so the "parallel" axis can be
    # sharded across TensorCores (v7x megacore) and the pipeline can overlap.
    if M > tm and M // tm < 2:
        tm = max(8, (pl.cdiv(M, 2) + 7) // 8 * 8)
    m_pad = pl.cdiv(M, tm) * tm
    x2d = xyz.reshape(M, C_in).astype(jnp.float32)
    if m_pad != M:
        x2d = jnp.pad(x2d, ((0, m_pad - M), (0, 0)))
    grid = (m_pad // tm,)

    cost = pl.CostEstimate(
        flops=2 * m_pad * E * (C_in + E),
        transcendentals=0,
        bytes_accessed=4 * (m_pad * C_in + m_pad * E + C_in * E + E * E + 2 * E),
    )

    out = pl.pallas_call(
        _abs_pe3d_kernel,
        grid=grid,
        in_specs=[
            pl.BlockSpec((tm, C_in), lambda i: (i, 0)),   # per-tile points
            pl.BlockSpec((C_in, E), lambda i: (0, 0)),    # small weights: resident
            pl.BlockSpec((1, E), lambda i: (0, 0)),
            pl.BlockSpec((E, E), lambda i: (0, 0)),
            pl.BlockSpec((1, E), lambda i: (0, 0)),
        ],
        out_specs=pl.BlockSpec((tm, E), lambda i: (i, 0)),
        out_shape=jax.ShapeDtypeStruct((m_pad, E), jnp.float32),
        compiler_params=pltpu.CompilerParams(
            dimension_semantics=("parallel",),
        ),
        cost_estimate=cost,
    )(x2d, w1t, b1f, w2t, b2r)

    return out[:M].reshape(B, N, E)


if __name__ == "__main__":
    key = jax.random.PRNGKey(0)
    B, N, C_IN, E = 2, 1024, 3, 128
    ks = jax.random.split(key, 8)

    xyz = jax.random.uniform(ks[0], (B, N, C_IN), jnp.float32, -1.0, 1.0)
    params = {
        "conv1_w": jax.random.normal(ks[1], (E, C_IN), jnp.float32) * 0.5,
        "conv1_b": jax.random.normal(ks[2], (E,), jnp.float32) * 0.1,
        "bn_w": jax.random.uniform(ks[3], (E,), jnp.float32, 0.5, 1.5),
        "bn_b": jax.random.normal(ks[4], (E,), jnp.float32) * 0.1,
        "bn_mean": jax.random.normal(ks[5], (E,), jnp.float32) * 0.1,
        "bn_var": jax.random.uniform(ks[6], (E,), jnp.float32, 0.5, 1.5),
        "conv2_w": jax.random.normal(ks[7], (E, E), jnp.float32) / jnp.sqrt(E),
        "conv2_b": jnp.zeros((E,), jnp.float32),
    }

    out = learned_absolute_position_encoding_3d(xyz, params, tm=512)
    out = jax.block_until_ready(out)

    # Plain-JAX reference mirroring the PyTorch eval-mode forward:
    # permute -> Conv1d(3,E,1) -> BatchNorm1d(E) -> ReLU -> Conv1d(E,E,1) -> permute.
    eps = 1e-5
    h = jnp.einsum("bnc,ec->bne", xyz, params["conv1_w"]) + params["conv1_b"]
    h = (h - params["bn_mean"]) / jnp.sqrt(params["bn_var"] + eps) * params["bn_w"] + params["bn_b"]
    h = jnp.maximum(h, 0.0)
    ref = jnp.einsum("bne,fe->bnf", h, params["conv2_w"]) + params["conv2_b"]

    assert out.shape == (B, N, E), out.shape
    assert out.dtype == jnp.float32
    max_err = float(jnp.max(jnp.abs(out - ref)))
    assert jnp.allclose(out, ref, atol=5e-3, rtol=5e-3), max_err
    print("KERNEL_OK")
</pallas_src>

<mosaic_0001>
module attributes {stable_mosaic.version = 11 : i64} {
  func.func @_abs_pe3d_kernel(%arg0: i32, %arg1: memref<512x3xf32, #tpu.memory_space<vmem>>, %arg2: memref<3x128xf32, #tpu.memory_space<vmem>>, %arg3: memref<1x128xf32, #tpu.memory_space<vmem>>, %arg4: memref<128x128xf32, #tpu.memory_space<vmem>>, %arg5: memref<1x128xf32, #tpu.memory_space<vmem>>, %arg6: memref<512x128xf32, #tpu.memory_space<vmem>>) attributes {dimension_semantics = [#tpu.dimension_semantics<parallel>], iteration_bounds = array<i64: 4>, scalar_prefetch = 0 : i64, scratch_operands = 0 : i64, tpu.core_type = #tpu.core_type<tc>, window_params = [{transform_indices = @transform_0, window_bounds = array<i64: 512, 3>}, {pipeline_mode = #tpu.pipeline_mode<synchronous>, transform_indices = @transform_1, window_bounds = array<i64: 3, 128>}, {pipeline_mode = #tpu.pipeline_mode<synchronous>, transform_indices = @transform_2, window_bounds = array<i64: 1, 128>}, {pipeline_mode = #tpu.pipeline_mode<synchronous>, transform_indices = @transform_3, window_bounds = array<i64: 128, 128>}, {pipeline_mode = #tpu.pipeline_mode<synchronous>, transform_indices = @transform_4, window_bounds = array<i64: 1, 128>}, {transform_indices = @transform_5, window_bounds = array<i64: 512, 128>}]} {
    %c0 = arith.constant 0 : index
    %c0_0 = arith.constant 0 : index
    %0 = vector.load %arg1[%c0, %c0_0] : memref<512x3xf32, #tpu.memory_space<vmem>>, vector<512x3xf32>
    %c0_1 = arith.constant 0 : index
    %c0_2 = arith.constant 0 : index
    %1 = vector.load %arg2[%c0_1, %c0_2] : memref<3x128xf32, #tpu.memory_space<vmem>>, vector<3x128xf32>
    %c0_3 = arith.constant 0 : index
    %c0_4 = arith.constant 0 : index
    %2 = vector.load %arg3[%c0_3, %c0_4] : memref<1x128xf32, #tpu.memory_space<vmem>>, vector<1x128xf32>
    %3 = vector.extract_strided_slice %0 {offsets = [0, 0], sizes = [512, 1], strides = [1, 1]} : vector<512x3xf32> to vector<512x1xf32>
    %4 = vector.extract_strided_slice %1 {offsets = [0, 0], sizes = [1, 128], strides = [1, 1]} : vector<3x128xf32> to vector<1x128xf32>
    %5 = vector.broadcast %3 : vector<512x1xf32> to vector<512x128xf32>
    %6 = vector.broadcast %4 : vector<1x128xf32> to vector<512x128xf32>
    %7 = arith.mulf %5, %6 : vector<512x128xf32>
    %8 = vector.broadcast %2 : vector<1x128xf32> to vector<512x128xf32>
    %9 = arith.addf %8, %7 : vector<512x128xf32>
    %10 = vector.extract_strided_slice %0 {offsets = [0, 1], sizes = [512, 1], strides = [1, 1]} : vector<512x3xf32> to vector<512x1xf32>
    %11 = vector.extract_strided_slice %1 {offsets = [1, 0], sizes = [1, 128], strides = [1, 1]} : vector<3x128xf32> to vector<1x128xf32>
    %12 = vector.broadcast %10 : vector<512x1xf32> to vector<512x128xf32>
    %13 = vector.broadcast %11 : vector<1x128xf32> to vector<512x128xf32>
    %14 = arith.mulf %12, %13 : vector<512x128xf32>
    %15 = arith.addf %9, %14 : vector<512x128xf32>
    %16 = vector.extract_strided_slice %0 {offsets = [0, 2], sizes = [512, 1], strides = [1, 1]} : vector<512x3xf32> to vector<512x1xf32>
    %17 = vector.extract_strided_slice %1 {offsets = [2, 0], sizes = [1, 128], strides = [1, 1]} : vector<3x128xf32> to vector<1x128xf32>
    %18 = vector.broadcast %16 : vector<512x1xf32> to vector<512x128xf32>
    %19 = vector.broadcast %17 : vector<1x128xf32> to vector<512x128xf32>
    %20 = arith.mulf %18, %19 : vector<512x128xf32>
    %21 = arith.addf %15, %20 : vector<512x128xf32>
    %cst = arith.constant 0.000000e+00 : f32
    %22 = vector.broadcast %cst : f32 to vector<512x128xf32>
    %23 = arith.maximumf %21, %22 : vector<512x128xf32>
    %c0_5 = arith.constant 0 : index
    %c0_6 = arith.constant 0 : index
    %24 = vector.load %arg4[%c0_5, %c0_6] : memref<128x128xf32, #tpu.memory_space<vmem>>, vector<128x128xf32>
    %cst_7 = arith.constant dense<0.000000e+00> : vector<512x128xf32>
    %25 = tpu.matmul %23, %24, %cst_7 {dimension_numbers = #tpu.dot_dimension_numbers<[1], [0], [0], [1], [0, 0, 1, 1], [], []>} : vector<512x128xf32>, vector<128x128xf32>, vector<512x128xf32> -> vector<512x128xf32>
    %c0_8 = arith.constant 0 : index
    %c0_9 = arith.constant 0 : index
    %26 = vector.load %arg5[%c0_8, %c0_9] : memref<1x128xf32, #tpu.memory_space<vmem>>, vector<1x128xf32>
    %27 = vector.broadcast %26 : vector<1x128xf32> to vector<512x128xf32>
    %28 = arith.addf %25, %27 : vector<512x128xf32>
    %c0_10 = arith.constant 0 : index
    %c0_11 = arith.constant 0 : index
    %29 = vector.load %arg6[%c0_10, %c0_11] : memref<512x128xf32, #tpu.memory_space<vmem>>, vector<512x128xf32>
    tpu.vector_store %arg6[%c0_10, %c0_11], %28 {strides = array<i32>} : memref<512x128xf32, #tpu.memory_space<vmem>>, vector<512x128xf32>,
    return
  }
  func.func @transform_0(%arg0: i32) -> (i32, i32) {
    %c0_i32 = arith.constant 0 : i32
    %c0_i32_0 = arith.constant 0 : i32
    return %arg0, %c0_i32 : i32, i32
  }
  func.func @transform_1(%arg0: i32) -> (i32, i32) {
    %c0_i32 = arith.constant 0 : i32
    %c0_i32_0 = arith.constant 0 : i32
    %c0_i32_1 = arith.constant 0 : i32
    return %c0_i32, %c0_i32_0 : i32, i32
  }
  func.func @transform_2(%arg0: i32) -> (i32, i32) {
    %c0_i32 = arith.constant 0 : i32
    %c0_i32_0 = arith.constant 0 : i32
    %c0_i32_1 = arith.constant 0 : i32
    return %c0_i32, %c0_i32_0 : i32, i32
  }
  func.func @transform_3(%arg0: i32) -> (i32, i32) {
    %c0_i32 = arith.constant 0 : i32
    %c0_i32_0 = arith.constant 0 : i32
    %c0_i32_1 = arith.constant 0 : i32
    return %c0_i32, %c0_i32_0 : i32, i32
  }
  func.func @transform_4(%arg0: i32) -> (i32, i32) {
    %c0_i32 = arith.constant 0 : i32
    %c0_i32_0 = arith.constant 0 : i32
    %c0_i32_1 = arith.constant 0 : i32
    return %c0_i32, %c0_i32_0 : i32, i32
  }
  func.func @transform_5(%arg0: i32) -> (i32, i32) {
    %c0_i32 = arith.constant 0 : i32
    %c0_i32_0 = arith.constant 0 : i32
    return %arg0, %c0_i32 : i32, i32
  }
}

</mosaic_0001>

<bundles_post_ra>
// kernel: tpu_custom_call.1
= control target key start
LH: loop header
LB: loop body
LE: loop exit
PB: predicated region body
PF: predicated region fallthrough
CT: control target
= control target key end

     0   :  { %10 = vsyncpa [#allocation3], 0  ;;  %s3529_s0 = inlined_call_operand.vmem [shape: f32[2048,3], index: 0, kind: input, shape index: {}]   ;;  %s3530_s1 = inlined_call_operand.vmem [shape: f32[3,128], index: 1, kind: input, shape index: {}]   ;;  %s3531_s2 = inlined_call_operand.vmem [shape: f32[1,128], index: 2, kind: input, shape index: {}]   ;;  %s3532_s3 = inlined_call_operand.vmem [shape: f32[128,128], index: 3, kind: input, shape index: {}]   ;;  %s3533_s4 = inlined_call_operand.vmem [shape: f32[1,128], index: 4, kind: input, shape index: {}]   ;;  %s3534_s5 = inlined_call_operand.hbm [shape: f32[2048,128], index: 5, kind: output, shape index: {}]  }
   0x1   :  { %12 = vsyncpa [#allocation3 + $0x1], 0  ;;  %s2177_s18 = smov 0   ;;  %s2179_s19 = smov 0  }
   0x2   :  { %s2181_s20 = smov 0   ;;  %s2183_s21 = smov 0  }
   0x3 LB: > { %s2198_s22 = sadd.s32 4294967295, %s2140_s21   ;;  %s1949_s23 = sadd.s32 4294967294, %s2140_s21   ;;  %s2140_s21 = sphi %s2183_s21, %s3758_s21   ;;  %s2136_s20 = sphi %s2181_s20, %s3757_s20   ;;  %s2132_s19 = sphi %s2179_s19, %s3756_s19   ;;  %s2128_s18 = sphi %s2177_s18, %s3755_s18  }
   0x4   : > { %s2202_s24 = sadd.s32 1, %s2140_s21   ;;  %s135_s25 = sadd.s32 1, %s2136_s20 }
   0x5   : > { %s132_s26 = ssub.s32 %s2140_s21, %s2202_s24  ;;  %p145_p0 = scmp.ne.s32.totalorder %s2136_s20, %s2132_s19 }
   0x6   : > { %p133_p1 = scmp.eq.s32.totalorder %s132_s26, 0  ;;  %p146_p2 = scmp.eq.s32.totalorder %s2198_s22, 3 }
   0x7   : > { %p151_p3 = scmp.ne.s32.totalorder %s2132_s19, %s2128_s18  ;;  %p152_p4 = scmp.eq.s32.totalorder %s1949_s23, 3 }
   0x8   : > { %s2213_s27 = scalar_select %p133_p1, %s2136_s20, %s135_s25  }
   0x9   : > { %p2215_p5 = por %p146_p2, %p145_p0  ;;  %p2219_p6 = por %p152_p4, %p151_p3 }
   0xa   : > { %p1952_p7 = scmp.ge.s32.totalorder %s2140_s21, 1  ;;  %p191_p8 = scmp.lt.s32.totalorder %s2140_s21, 5 }
   0xc   : > { %p192_p9 = pnand %p1952_p7, %p191_p8 }
   0xe   : > { %195 = sbr.rel (%p192_p9) target bundleno = 794 (0x31a), region = 40 }
  0x13   : > { %s1954_s30 = sshll.u32 %s2198_s22, 6  ;;  %v2142_v0 = vmov 0   ;;  %s216_s17 = sand.u32 1, %s2132_s19  }
  0x14   : > { %2056 = vset.pattern.permute.xlu2 %v2142_v0  ;;  %2055 = vset.pattern.permute.xlu1 %v2142_v0  ;;  %p220_p10 = scmp.lt.s32.totalorder %s1954_s30, 255  ;;  %s1953_s23 = sshll.u32 %s216_s17, 9 }
  0x15   : > { %2054 = vset.pattern.permute.xlu0 %v2142_v0  ;;  %s2098_s16 = scalar_lea.hbm %s3534_s5, 2048 }
  0x16   : > { %s3760_s30 = smov (!%p220_p10, %s1954_s30), 255 }
  0x17   : > { %s1955_s6 = sshll.u32 %s3760_s30, 3  ;;  %s3327_s30 = scalar_lea.vmem [#allocation2], %s1953_s23 }
  0x18   : > { %s2229_s9 = scalar_lea.vmem %s3529_s0, %s1955_s6  ;;  %s1961_s6 = sshll.u32 %s2198_s22, 9 }
  0x19   : > { %v2232_v1 = vld [vmem:[%s2229_s9 + $0x20] sm:$0xff]  ;;  %v2235_v2 = vld [vmem:[%s2229_s9 + $0x10] sm:$0xff]  ;;  %v2244_v4 = vld [vmem:[%s2229_s9 + $0x28] sm:$0xff]  ;;  %s1883_s10 = scalar_lea.hbm %s3534_s5, %s1961_s6  ;;  %s1884_s11 = sshll.u32 %s3327_s30, 4  ;;  %s1885_s11 = int_to_ptr.vmem [resolvable:$true] %s1884_s11 }
  0x1a   : > { %v2238_v3 = vld [vmem:[%s2229_s9] sm:$0xff]  ;;  %314 = vperm.xlu2 %2056, %v2232_v1   ;;  %304 = vperm.xlu1 %2055, %v2235_v2   ;;  %v2247_v5 = vld [vmem:[%s2229_s9 + $0x18] sm:$0xff]  ;;  %v2250_v6 = vld [vmem:[%s2229_s9 + $0x8] sm:$0xff]  ;;  %s1886_s12 = sshll.u32 %s1883_s10, 4  ;;  %s1872_s22 = scalar_lea.sflag [#allocation3], %s216_s17  ;;  %s1887_s12 = int_to_ptr.hbm [resolvable:$true] %s1886_s12 }
  0x1b   : > { %294 = vperm.xlu0 %2054, %v2238_v3   ;;  %3559 = vst [vmem:[#allocation5_spill] sm:$0xff] %v2250_v6  ;;  %v2256_v7 = vld [vmem:[%s2229_s9 + $0x40] sm:$0xff]  ;;  %v2259_v8 = vld [vmem:[%s2229_s9 + $0x38] sm:$0xff]  ;;  %v2262_v9 = vld [vmem:[%s2229_s9 + $0x30] sm:$0xff]  ;;  %s2092_s13 = sshra.s32 %s1887_s12, 4  ;;  %s2093_s13 = int_to_ptr.hbm [resolvable:$true] %s2092_s13 }
  0x1c   : > { %v2268_v10 = vld [vmem:[%s2229_s9 + $0x58] sm:$0xff]  ;;  %v2271_v11 = vld [vmem:[%s2229_s9 + $0x50] sm:$0xff]  ;;  %v2274_v12 = vld [vmem:[%s2229_s9 + $0x48] sm:$0xff]  ;;  %s2094_s14 = scalar_lea.hbm %s2093_s13, 512  ;;  %p2099_p0 = scmp.lt.s32.totalorder %s2093_s13, %s3534_s5 }
  0x1d   : > { %v2280_v13 = vld [vmem:[%s2229_s9 + $0x70] sm:$0xff]  ;;  %v2283_v14 = vld [vmem:[%s2229_s9 + $0x68] sm:$0xff]  ;;  %v2286_v15 = vld [vmem:[%s2229_s9 + $0x60] sm:$0xff]  ;;  %p2095_p11 = scmp.ne.s32.totalorder %s2093_s13, %s2094_s14  ;;  %p2100_p1 = scmp.lt.s32.totalorder %s2098_s16, %s2094_s14 }
  0x1e   : > { %v2292_v16 = vld [vmem:[%s2229_s9 + $0x88] sm:$0xff]  ;;  %v2295_v17 = vld [vmem:[%s2229_s9 + $0x80] sm:$0xff]  ;;  %v2298_v18 = vld [vmem:[%s2229_s9 + $0x78] sm:$0xff] }
  0x1f   : > { %v2304_v19 = vld [vmem:[%s2229_s9 + $0xa0] sm:$0xff]  ;;  %v2307_v20 = vld [vmem:[%s2229_s9 + $0x98] sm:$0xff]  ;;  %v2310_v21 = vld [vmem:[%s2229_s9 + $0x90] sm:$0xff]  ;;  %p2096_p12 = pnand %p2095_p11, %p2215_p5  ;;  %p2101_p2 = por %p2100_p1, %p2099_p0 }
  0x20   : > { %v2316_v22 = vld [vmem:[%s2229_s9 + $0xb8] sm:$0xff]  ;;  %v2319_v23 = vld [vmem:[%s2229_s9 + $0xb0] sm:$0xff]  ;;  %v2322_v24 = vld [vmem:[%s2229_s9 + $0xa8] sm:$0xff] }
  0x21   : > { %3560 = vst [vmem:[#allocation6_spill] sm:$0xff] %v2316_v22  ;;  %v2328_v25 = vld [vmem:[%s2229_s9 + $0xd0] sm:$0xff]  ;;  %v2331_v26 = vld [vmem:[%s2229_s9 + $0xc8] sm:$0xff]  ;;  %v2334_v27 = vld [vmem:[%s2229_s9 + $0xc0] sm:$0xff]  ;;  %p2097_p13 = pneg %p2096_p12 }
  0x22   : > { %319 = vperm.xlu2 %2056, %v2244_v4   ;;  %309 = vperm.xlu1 %2055, %v2247_v5   ;;  %3561 = vst [vmem:[#allocation7_spill] sm:$0xff] %v2319_v23  ;;  %v2340_v28 = vld [vmem:[%s2229_s9 + $0xe8] sm:$0xff]  ;;  %v2343_v29 = vld [vmem:[%s2229_s9 + $0xe0] sm:$0xff]  ;;  %v2346_v30 = vld [vmem:[%s2229_s9 + $0xd8] sm:$0xff] }
  0x23   : > { %299 = vperm.xlu0 %2054, %v2250_v6   ;;  %3562 = vst [vmem:[#allocation8_spill] sm:$0xff] %v2331_v26  ;;  %v2352_v31 = vld [vmem:[%s2229_s9 + $0x100] sm:$0xff]  ;;  %v2355_v32 = vld [vmem:[%s2229_s9 + $0xf8] sm:$0xff]  ;;  %v2358_v33 = vld [vmem:[%s2229_s9 + $0xf0] sm:$0xff]  ;;  %p2102_p3 = pnand %p2101_p2, %p2097_p13 }
  0x24   : > { %3563 = vst [vmem:[#allocation9_spill] sm:$0xff] %v2334_v27  ;;  %v2364_v34 = vld [vmem:[%s2229_s9 + $0x118] sm:$0xff]  ;;  %v2367_v35 = vld [vmem:[%s2229_s9 + $0x110] sm:$0xff]  ;;  %v2370_v36 = vld [vmem:[%s2229_s9 + $0x108] sm:$0xff] }
  0x25   : > { %v2378_v38 = vld [vmem:[%s2229_s9 + $0x130] sm:$0xff]  ;;  %v2381_v39 = vld [vmem:[%s2229_s9 + $0x128] sm:$0xff]  ;;  %v2384_v40 = vld [vmem:[%s2229_s9 + $0x120] sm:$0xff] }
  0x26   : > { %v2392_v42 = vld [vmem:[%s2229_s9 + $0x148] sm:$0xff]  ;;  %v2395_v43 = vld [vmem:[%s2229_s9 + $0x140] sm:$0xff]  ;;  %v2398_v44 = vld [vmem:[%s2229_s9 + $0x138] sm:$0xff] }
  0x27   : > { %v2406_v46 = vld [vmem:[%s2229_s9 + $0x160] sm:$0xff]  ;;  %v2409_v47 = vld [vmem:[%s2229_s9 + $0x158] sm:$0xff]  ;;  %v2412_v48 = vld [vmem:[%s2229_s9 + $0x150] sm:$0xff] }
  0x28   : > { %3567 = vst [vmem:[#allocation13_spill] sm:$0xff] %v2406_v46  ;;  %v2424_v52 = vld [vmem:[%s2229_s9 + $0x178] sm:$0xff]  ;;  %v2427_v53 = vld [vmem:[%s2229_s9 + $0x170] sm:$0xff]  ;;  %v2430_v54 = vld [vmem:[%s2229_s9 + $0x168] sm:$0xff] }
  0x29   : > { %3568 = vst [vmem:[#allocation14_spill] sm:$0xff] %v2409_v47  ;;  %v2442_v58 = vld [vmem:[%s2229_s9 + $0x190] sm:$0xff]  ;;  %v2445_v59 = vld [vmem:[%s2229_s9 + $0x188] sm:$0xff]  ;;  %v2448_v60 = vld [vmem:[%s2229_s9 + $0x180] sm:$0xff] }
  0x2a   : > { %334 = vperm.xlu2 %2056, %v2256_v7   ;;  %329 = vperm.xlu1 %2055, %v2259_v8   ;;  %3569 = vst [vmem:[#allocation15_spill] sm:$0xff] %v2412_v48  ;;  %v2460_v0 = vld [vmem:[%s2229_s9 + $0x1a8] sm:$0xff] }
  0x2b   : > { %324 = vperm.xlu0 %2054, %v2262_v9   ;;  %3573 = vst [vmem:[#allocation19_spill] sm:$0xff] %v2430_v54 }
  0x32   : > { %349 = vperm.xlu2 %2056, %v2268_v10   ;;  %344 = vperm.xlu1 %2055, %v2271_v11  }
  0x33   : > { %339 = vperm.xlu0 %2054, %v2274_v12  }
  0x3a   : > { %364 = vperm.xlu2 %2056, %v2280_v13   ;;  %359 = vperm.xlu1 %2055, %v2283_v14  }
  0x3b   : > { %354 = vperm.xlu0 %2054, %v2286_v15  }
  0x42   : > { %379 = vperm.xlu2 %2056, %v2292_v16   ;;  %374 = vperm.xlu1 %2055, %v2295_v17  }
  0x43   : > { %369 = vperm.xlu0 %2054, %v2298_v18  }
  0x4a   : > { %394 = vperm.xlu2 %2056, %v2304_v19   ;;  %389 = vperm.xlu1 %2055, %v2307_v20  }
  0x4b   : > { %384 = vperm.xlu0 %2054, %v2310_v21  }
  0x52   : > { %409 = vperm.xlu2 %2056, %v2316_v22   ;;  %404 = vperm.xlu1 %2055, %v2319_v23  }
  0x53   : > { %399 = vperm.xlu0 %2054, %v2322_v24  }
  0x5a   : > { %424 = vperm.xlu2 %2056, %v2328_v25   ;;  %419 = vperm.xlu1 %2055, %v2331_v26  }
  0x5b   : > { %414 = vperm.xlu0 %2054, %v2334_v27  }
  0x62   : > { %439 = vperm.xlu2 %2056, %v2340_v28   ;;  %434 = vperm.xlu1 %2055, %v2343_v29  }
  0x63   : > { %429 = vperm.xlu0 %2054, %v2346_v30  }
  0x6a   : > { %454 = vperm.xlu2 %2056, %v2352_v31   ;;  %449 = vperm.xlu1 %2055, %v2355_v32  }
  0x6b   : > { %444 = vperm.xlu0 %2054, %v2358_v33  }
  0x72   : > { %469 = vperm.xlu2 %2056, %v2364_v34   ;;  %464 = vperm.xlu1 %2055, %v2367_v35  }
  0x73   : > { %459 = vperm.xlu0 %2054, %v2370_v36  }
  0x74   : > { %v2375_v37 = vpop.permute.xlu2 %314 }
  0x75   : > { %3564 = vst [vmem:[#allocation10_spill] sm:$0xff] %v2375_v37  ;;  %v2484_v37 = vld [vmem:[%s2229_s9 + $0x1b0] sm:$0xff] }
  0x7a   : > { %484 = vperm.xlu2 %2056, %v2378_v38   ;;  %479 = vperm.xlu1 %2055, %v2381_v39  }
  0x7b   : > { %474 = vperm.xlu0 %2054, %v2384_v40  }
  0x7c   : > { %v2389_v41 = vpop.permute.xlu2 %319 }
  0x7d   : > { %3565 = vst [vmem:[#allocation11_spill] sm:$0xff] %v2389_v41  ;;  %v2478_v41 = vld [vmem:[%s2229_s9 + $0x1c0] sm:$0xff] }
  0x7e   : > { %3583 = vst [vmem:[#allocation29_spill] sm:$0xff] %v2478_v41 }
  0x82   : > { %499 = vperm.xlu2 %2056, %v2392_v42   ;;  %494 = vperm.xlu1 %2055, %v2395_v43  }
  0x83   : > { %489 = vperm.xlu0 %2054, %v2398_v44  }
  0x84   : > { %v2403_v45 = vpop.permute.xlu2 %334 }
  0x85   : > { %3566 = vst [vmem:[#allocation12_spill] sm:$0xff] %v2403_v45 }
  0x8a   : > { %514 = vperm.xlu2 %2056, %v2406_v46   ;;  %509 = vperm.xlu1 %2055, %v2409_v47  }
  0x8b   : > { %504 = vperm.xlu0 %2054, %v2412_v48  }
  0x8c   : > { %v2417_v49 = vpop.permute.xlu2 %349  ;;  %v2419_v50 = vpop.permute.xlu1 %304 }
  0x8d   : > { %3570 = vst [vmem:[#allocation16_spill] sm:$0xff] %v2417_v49  ;;  %v2421_v51 = vpop.permute.xlu0 %294  ;;  %v2466_v49 = vld [vmem:[%s2229_s9 + $0x198] sm:$0xff] }
  0x8e   : > { %3571 = vst [vmem:[#allocation17_spill] sm:$0xff] %v2419_v50  ;;  %v2496_v50 = vld [vmem:[%s2229_s9 + $0x1d8] sm:$0xff] }
  0x8f   : > { %3572 = vst [vmem:[#allocation18_spill] sm:$0xff] %v2421_v51 }
  0x90   : > { %3588 = vst [vmem:[#allocation34_spill] sm:$0xff] %v2496_v50 }
  0x92   : > { %529 = vperm.xlu2 %2056, %v2424_v52   ;;  %524 = vperm.xlu1 %2055, %v2427_v53  }
  0x93   : > { %519 = vperm.xlu0 %2054, %v2430_v54  }
  0x94   : > { %v2435_v55 = vpop.permute.xlu2 %364  ;;  %v2437_v56 = vpop.permute.xlu1 %309 }
  0x95   : > { %3574 = vst [vmem:[#allocation20_spill] sm:$0xff] %v2435_v55  ;;  %v2439_v57 = vpop.permute.xlu0 %299  ;;  %v2463_v55 = vld [vmem:[%s2229_s9 + $0x1a0] sm:$0xff] }
  0x96   : > { %3575 = vst [vmem:[#allocation21_spill] sm:$0xff] %v2437_v56 }
  0x97   : > { %3576 = vst [vmem:[#allocation22_spill] sm:$0xff] %v2439_v57  ;;  %v2502_v57 = vld [vmem:[%s2229_s9 + $0x1c8] sm:$0xff] }
  0x98   : > { %3590 = vst [vmem:[#allocation36_spill] sm:$0xff] %v2502_v57 }
  0x9a   : > { %544 = vperm.xlu2 %2056, %v2442_v58   ;;  %539 = vperm.xlu1 %2055, %v2445_v59  }
  0x9b   : > { %534 = vperm.xlu0 %2054, %v2448_v60  }
  0x9c   : > { %v2453_v61 = vpop.permute.xlu2 %379  ;;  %v2455_v62 = vpop.permute.xlu1 %329 }
  0x9d   : > { %3577 = vst [vmem:[#allocation23_spill] sm:$0xff] %v2453_v61  ;;  %v2457_v63 = vpop.permute.xlu0 %324  ;;  %v2481_v61 = vld [vmem:[%s2229_s9 + $0x1b8] sm:$0xff] }
  0x9e   : > { %3578 = vst [vmem:[#allocation24_spill] sm:$0xff] %v2455_v62 }
  0x9f   : > { %3579 = vst [vmem:[#allocation25_spill] sm:$0xff] %v2457_v63 }
  0xa0   : > { %3584 = vst [vmem:[#allocation30_spill] sm:$0xff] %v2481_v61 }
  0xa2   : > { %559 = vperm.xlu2 %2056, %v2460_v0   ;;  %554 = vperm.xlu1 %2055, %v2463_v55  }
  0xa3   : > { %549 = vperm.xlu0 %2054, %v2466_v49  }
  0xa4   : > { %v2471_v45 = vpop.permute.xlu2 %394  ;;  %v2473_v62 = vpop.permute.xlu1 %344 }
  0xa5   : > { %3580 = vst [vmem:[#allocation26_spill] sm:$0xff] %v2471_v45  ;;  %v2475_v63 = vpop.permute.xlu0 %339 }
  0xa6   : > { %3581 = vst [vmem:[#allocation27_spill] sm:$0xff] %v2473_v62  ;;  %v2499_v62 = vld [vmem:[%s2229_s9 + $0x1d0] sm:$0xff] }
  0xa7   : > { %3582 = vst [vmem:[#allocation28_spill] sm:$0xff] %v2475_v63 }
  0xa8   : > { %3589 = vst [vmem:[#allocation35_spill] sm:$0xff] %v2499_v62 }
  0xaa   : > { %574 = vperm.xlu2 %2056, %v2478_v41   ;;  %569 = vperm.xlu1 %2055, %v2481_v61   ;;  %v2517_v41 = vld [vmem:[%s2229_s9 + $0x1e8] sm:$0xff]  ;;  %v2520_v61 = vld [vmem:[%s2229_s9 + $0x1e0] sm:$0xff] }
  0xab   : > { %564 = vperm.xlu0 %2054, %v2484_v37   ;;  %3595 = vst [vmem:[#allocation41_spill] sm:$0xff] %v2517_v41 }
  0xac   : > { %v2489_v45 = vpop.permute.xlu2 %409  ;;  %v2491_v56 = vpop.permute.xlu1 %359  ;;  %3596 = vst [vmem:[#allocation42_spill] sm:$0xff] %v2520_v61 }
  0xad   : > { %3585 = vst [vmem:[#allocation31_spill] sm:$0xff] %v2489_v45  ;;  %v2493_v63 = vpop.permute.xlu0 %354 }
  0xae   : > { %3586 = vst [vmem:[#allocation32_spill] sm:$0xff] %v2491_v56 }
  0xaf   : > { %3587 = vst [vmem:[#allocation33_spill] sm:$0xff] %v2493_v63  ;;  %v2514_v63 = vld [vmem:[%s2229_s9 + $0x1f0] sm:$0xff] }
  0xb0   : > { %3594 = vst [vmem:[#allocation40_spill] sm:$0xff] %v2514_v63 }
  0xb2   : > { %589 = vperm.xlu2 %2056, %v2496_v50   ;;  %584 = vperm.xlu1 %2055, %v2499_v62  }
  0xb3   : > { %579 = vperm.xlu0 %2054, %v2502_v57  }
  0xb4   : > { %v2507_v51 = vpop.permute.xlu2 %424  ;;  %v2509_v45 = vpop.permute.xlu1 %374 }
  0xb5   : > { %3591 = vst [vmem:[#allocation37_spill] sm:$0xff] %v2507_v51  ;;  %v2511_v56 = vpop.permute.xlu0 %369 }
  0xb6   : > { %3592 = vst [vmem:[#allocation38_spill] sm:$0xff] %v2509_v45  ;;  %v2532_v45 = vld [vmem:[%s2229_s9 + $0x1f8] sm:$0xff] }
  0xb7   : > { %3593 = vst [vmem:[#allocation39_spill] sm:$0xff] %v2511_v56  ;;  %v2143_v56 = vmov 1  }
  0xba   : > { %604 = vperm.xlu2 %2056, %v2514_v63   ;;  %599 = vperm.xlu1 %2055, %v2517_v41  }
  0xbb   : > { %594 = vperm.xlu0 %2054, %v2520_v61  }
  0xbc   : > { %v2525_v50 = vpop.permute.xlu2 %439  ;;  %v2527_v62 = vpop.permute.xlu1 %389 }
  0xbd   : > { %3597 = vst [vmem:[#allocation43_spill] sm:$0xff] %v2525_v50  ;;  %v2529_v51 = vpop.permute.xlu0 %384 }
  0xbe   : > { %3598 = vst [vmem:[#allocation44_spill] sm:$0xff] %v2527_v62 }
  0xbf   : > { %3599 = vst [vmem:[#allocation45_spill] sm:$0xff] %v2529_v51 }
  0xc2   : > { %2058 = vset.pattern.permute.xlu2 %v2143_v56  ;;  %2057 = vset.pattern.permute.xlu1 %v2143_v56 }
  0xc3   : > { %609 = vperm.xlu0 %2054, %v2532_v45   ;;  %749 = vperm.xlu2 %2058, %v2250_v6  }
  0xc4   : > { %745 = vperm.xlu1 %2057, %v2238_v3   ;;  %v2537_v63 = vpop.permute.xlu2 %454  ;;  %v2539_v41 = vpop.permute.xlu1 %404 }
  0xc5   : > { %3600 = vst [vmem:[#allocation46_spill] sm:$0xff] %v2537_v63  ;;  %v2541_v50 = vpop.permute.xlu0 %399 }
  0xc6   : > { %3601 = vst [vmem:[#allocation47_spill] sm:$0xff] %v2539_v41 }
  0xc7   : > { %3602 = vst [vmem:[#allocation48_spill] sm:$0xff] %v2541_v50 }
  0xcb   : > { %2059 = vset.pattern.permute.xlu0 %v2143_v56  ;;  %761 = vperm.xlu2 %2058, %v2232_v1  }
  0xcc   : > { %757 = vperm.xlu1 %2057, %v2247_v5   ;;  %753 = vperm.xlu0 %2059, %v2235_v2   ;;  %v2546_v62 = vpop.permute.xlu2 %469  ;;  %v2548_v51 = vpop.permute.xlu1 %419 }
  0xcd   : > { %3603 = vst [vmem:[#allocation49_spill] sm:$0xff] %v2546_v62  ;;  %v2550_v6 = vpop.permute.xlu0 %414 }
  0xce   : > { %3604 = vst [vmem:[#allocation50_spill] sm:$0xff] %v2548_v51 }
  0xcf   : > { %3605 = vst [vmem:[#allocation51_spill] sm:$0xff] %v2550_v6 }
  0xd3   : > { %769 = vperm.xlu2 %2058, %v2262_v9  }
  0xd4   : > { %765 = vperm.xlu1 %2057, %v2244_v4   ;;  %773 = vperm.xlu0 %2059, %v2259_v8   ;;  %v2555_v41 = vpop.permute.xlu2 %484  ;;  %v2557_v56 = vpop.permute.xlu1 %434 }
  0xd5   : > { %3606 = vst [vmem:[#allocation52_spill] sm:$0xff] %v2555_v41  ;;  %v2559_v50 = vpop.permute.xlu0 %429 }
  0xd6   : > { %3607 = vst [vmem:[#allocation53_spill] sm:$0xff] %v2557_v56 }
  0xd7   : > { %3608 = vst [vmem:[#allocation54_spill] sm:$0xff] %v2559_v50 }
  0xdb   : > { %781 = vperm.xlu2 %2058, %v2274_v12  }
  0xdc   : > { %777 = vperm.xlu1 %2057, %v2256_v7   ;;  %785 = vperm.xlu0 %2059, %v2271_v11   ;;  %v2564_v51 = vpop.permute.xlu2 %499  ;;  %v2566_v6 = vpop.permute.xlu1 %449 }
  0xdd   : > { %3609 = vst [vmem:[#allocation55_spill] sm:$0xff] %v2564_v51  ;;  %v2568_v62 = vpop.permute.xlu0 %444 }
  0xde   : > { %3610 = vst [vmem:[#allocation56_spill] sm:$0xff] %v2566_v6 }
  0xdf   : > { %3611 = vst [vmem:[#allocation57_spill] sm:$0xff] %v2568_v62 }
  0xe3   : > { %793 = vperm.xlu2 %2058, %v2286_v15  }
  0xe4   : > { %789 = vperm.xlu1 %2057, %v2268_v10   ;;  %797 = vperm.xlu0 %2059, %v2283_v14   ;;  %v2573_v56 = vpop.permute.xlu2 %514  ;;  %v2575_v50 = vpop.permute.xlu1 %464 }
  0xe5   : > { %3612 = vst [vmem:[#allocation58_spill] sm:$0xff] %v2573_v56  ;;  %v2577_v41 = vpop.permute.xlu0 %459 }
  0xe6   : > { %3613 = vst [vmem:[#allocation59_spill] sm:$0xff] %v2575_v50 }
  0xe7   : > { %3614 = vst [vmem:[#allocation60_spill] sm:$0xff] %v2577_v41 }
  0xeb   : > { %805 = vperm.xlu2 %2058, %v2298_v18  }
  0xec   : > { %801 = vperm.xlu1 %2057, %v2280_v13   ;;  %809 = vperm.xlu0 %2059, %v2295_v17   ;;  %v2582_v6 = vpop.permute.xlu2 %529  ;;  %v2584_v62 = vpop.permute.xlu1 %479 }
  0xed   : > { %3615 = vst [vmem:[#allocation61_spill] sm:$0xff] %v2584_v62  ;;  %v2586_v51 = vpop.permute.xlu0 %474 }
  0xee   : > { %3616 = vst [vmem:[#allocation62_spill] sm:$0xff] %v2586_v51 }
  0xf3   : > { %817 = vperm.xlu2 %2058, %v2310_v21  }
  0xf4   : > { %813 = vperm.xlu1 %2057, %v2292_v16   ;;  %821 = vperm.xlu0 %2059, %v2307_v20   ;;  %v2591_v56 = vpop.permute.xlu2 %544  ;;  %v2593_v50 = vpop.permute.xlu1 %494 }
  0xf5   : > { %3617 = vst [vmem:[#allocation63_spill] sm:$0xff] %v2593_v50  ;;  %v2595_v18 = vpop.permute.xlu0 %489 }
  0xf6   : > { %3618 = vst [vmem:[#allocation64_spill] sm:$0xff] %v2595_v18 }
  0xfb   : > { %829 = vperm.xlu2 %2058, %v2322_v24  }
  0xfc   : > { %825 = vperm.xlu1 %2057, %v2304_v19   ;;  %833 = vperm.xlu0 %2059, %v2319_v23   ;;  %v2600_v13 = vpop.permute.xlu2 %559  ;;  %v2602_v62 = vpop.permute.xlu1 %509 }
  0xfd   : > { %3619 = vst [vmem:[#allocation65_spill] sm:$0xff] %v2602_v62  ;;  %v2604_v51 = vpop.permute.xlu0 %504 }
 0x103   : > { %841 = vperm.xlu2 %2058, %v2334_v27  }
 0x104   : > { %837 = vperm.xlu1 %2057, %v2316_v22   ;;  %845 = vperm.xlu0 %2059, %v2331_v26   ;;  %v2609_v50 = vpop.permute.xlu2 %574  ;;  %v2611_v18 = vpop.permute.xlu1 %524 }
 0x105   : > { %3620 = vst [vmem:[#allocation66_spill] sm:$0xff] %v2611_v18  ;;  %v2613_v41 = vpop.permute.xlu0 %519 }
 0x10b   : > { %853 = vperm.xlu2 %2058, %v2346_v30  }
 0x10c   : > { %849 = vperm.xlu1 %2057, %v2328_v25   ;;  %857 = vperm.xlu0 %2059, %v2343_v29   ;;  %v2618_v62 = vpop.permute.xlu2 %589  ;;  %v2620_v63 = vpop.permute.xlu1 %539 }
 0x10d   : > { %3621 = vst [vmem:[#allocation67_spill] sm:$0xff] %v2618_v62  ;;  %v2622_v27 = vpop.permute.xlu0 %534 }
 0x113   : > { %865 = vperm.xlu2 %2058, %v2358_v33  }
 0x114   : > { %861 = vperm.xlu1 %2057, %v2340_v28   ;;  %869 = vperm.xlu0 %2059, %v2355_v32   ;;  %v2627_v18 = vpop.permute.xlu2 %604  ;;  %v2629_v26 = vpop.permute.xlu1 %554 }
 0x115   : > { %3622 = vst [vmem:[#allocation68_spill] sm:$0xff] %v2627_v18  ;;  %v2631_v30 = vpop.permute.xlu0 %549 }
 0x11b   : > { %877 = vperm.xlu2 %2058, %v2370_v36  }
 0x11c   : > { %873 = vperm.xlu1 %2057, %v2352_v31   ;;  %881 = vperm.xlu0 %2059, %v2367_v35   ;;  %v2636_v25 = vpop.permute.xlu1 %569 }
 0x11d   : > { %v2638_v29 = vpop.permute.xlu0 %564  ;;  %v2640_v33 = vpop.permute.xlu2 %749 }
 0x11e   : > { %3623 = vst [vmem:[#allocation69_spill] sm:$0xff] %v2640_v33 }
 0x123   : > { %889 = vperm.xlu2 %2058, %v2384_v40  }
 0x124   : > { %885 = vperm.xlu1 %2057, %v2364_v34   ;;  %893 = vperm.xlu0 %2059, %v2381_v39   ;;  %v2645_v28 = vpop.permute.xlu1 %584 }
 0x125   : > { %3624 = vst [vmem:[#allocation70_spill] sm:$0xff] %v2645_v28  ;;  %v2647_v32 = vpop.permute.xlu0 %579  ;;  %v2649_v18 = vpop.permute.xlu2 %761 }
 0x126   : > { %3625 = vst [vmem:[#allocation71_spill] sm:$0xff] %v2649_v18 }
 0x12b   : > { %901 = vperm.xlu2 %2058, %v2398_v44  }
 0x12c   : > { %897 = vperm.xlu1 %2057, %v2378_v38   ;;  %905 = vperm.xlu0 %2059, %v2395_v43   ;;  %v2654_v22 = vpop.permute.xlu1 %599 }
 0x12d   : > { %3626 = vst [vmem:[#allocation72_spill] sm:$0xff] %v2654_v22  ;;  %v2656_v33 = vpop.permute.xlu0 %594  ;;  %v2658_v62 = vpop.permute.xlu2 %769 }
 0x12e   : > { %3627 = vst [vmem:[#allocation73_spill] sm:$0xff] %v2658_v62 }
 0x133   : > { %913 = vperm.xlu2 %2058, %v2412_v48  }
 0x134   : > { %909 = vperm.xlu1 %2057, %v2392_v42   ;;  %917 = vperm.xlu0 %2059, %v2409_v47  }
 0x135   : > { %v2663_v23 = vpop.permute.xlu0 %609  ;;  %v2665_v18 = vpop.permute.xlu2 %781 }
 0x136   : > { %3628 = vst [vmem:[#allocation74_spill] sm:$0xff] %v2665_v18  ;;  %v2667_v28 = vpop.permute.xlu1 %745 }
 0x137   : > { %3629 = vst [vmem:[#allocation75_spill] sm:$0xff] %v2667_v28  ;;  %v3647_v28 = vld [vmem:[#allocation34_spill] sm:$0xff] }
 0x13b   : > { %925 = vperm.xlu2 %2058, %v2430_v54  }
 0x13c   : > { %921 = vperm.xlu1 %2057, %v2406_v46   ;;  %929 = vperm.xlu0 %2059, %v2427_v53   ;;  %v3643_v46 = vld [vmem:[#allocation29_spill] sm:$0xff] }
 0x13d   : > { %v2672_v22 = vpop.permute.xlu2 %793 }
 0x13e   : > { %3630 = vst [vmem:[#allocation76_spill] sm:$0xff] %v2672_v22  ;;  %v2674_v62 = vpop.permute.xlu1 %757  ;;  %v2676_v48 = vpop.permute.xlu0 %753 }
 0x13f   : > { %3631 = vst [vmem:[#allocation77_spill] sm:$0xff] %v2674_v62 }
 0x140   : > { %3632 = vst [vmem:[#allocation78_spill] sm:$0xff] %v2676_v48 }
 0x143   : > { %937 = vperm.xlu2 %2058, %v2448_v60  }
 0x144   : > { %933 = vperm.xlu1 %2057, %v2424_v52   ;;  %941 = vperm.xlu0 %2059, %v2445_v59   ;;  %v3639_v52 = vld [vmem:[#allocation30_spill] sm:$0xff] }
 0x145   : > { %v2681_v18 = vpop.permute.xlu2 %805 }
 0x146   : > { %3633 = vst [vmem:[#allocation79_spill] sm:$0xff] %v2681_v18  ;;  %v2683_v47 = vpop.permute.xlu1 %765  ;;  %v2685_v54 = vpop.permute.xlu0 %773 }
 0x147   : > { %3634 = vst [vmem:[#allocation80_spill] sm:$0xff] %v2683_v47 }
 0x148   : > { %3635 = vst [vmem:[#allocation81_spill] sm:$0xff] %v2685_v54 }
 0x14b   : > { %949 = vperm.xlu2 %2058, %v2466_v49  }
 0x14c   : > { %945 = vperm.xlu1 %2057, %v2442_v58   ;;  %953 = vperm.xlu0 %2059, %v2463_v55  }
 0x14d   : > { %v2690_v53 = vpop.permute.xlu2 %817 }
 0x14e   : > { %3636 = vst [vmem:[#allocation82_spill] sm:$0xff] %v2690_v53  ;;  %v2692_v22 = vpop.permute.xlu1 %777  ;;  %v2694_v62 = vpop.permute.xlu0 %785  ;;  %v3644_v53 = vld [vmem:[#allocation35_spill] sm:$0xff] }
 0x14f   : > { %3637 = vst [vmem:[#allocation83_spill] sm:$0xff] %v2692_v22 }
 0x150   : > { %3638 = vst [vmem:[#allocation84_spill] sm:$0xff] %v2694_v62 }
 0x153   : > { %961 = vperm.xlu2 %2058, %v2484_v37  }
 0x154   : > { %957 = vperm.xlu1 %2057, %v2460_v0   ;;  %965 = vperm.xlu0 %2059, %v3639_v52  }
 0x155   : > { %v2699_v18 = vpop.permute.xlu2 %829 }
 0x156   : > { %3640 = vst [vmem:[#allocation30_spill] sm:$0xff] %v2699_v18  ;;  %v2701_v54 = vpop.permute.xlu1 %789  ;;  %v2703_v47 = vpop.permute.xlu0 %797  ;;  %v3648_v18 = vld [vmem:[#allocation41_spill] sm:$0xff] }
 0x157   : > { %3641 = vst [vmem:[#allocation85_spill] sm:$0xff] %v2701_v54 }
 0x158   : > { %3642 = vst [vmem:[#allocation86_spill] sm:$0xff] %v2703_v47 }
 0x15b   : > { %973 = vperm.xlu2 %2058, %v2502_v57  }
 0x15c   : > { %969 = vperm.xlu1 %2057, %v3643_v46   ;;  %977 = vperm.xlu0 %2059, %v3644_v53   ;;  %v3651_v53 = vld [vmem:[#allocation40_spill] sm:$0xff] }
 0x15d   : > { %v2708_v22 = vpop.permute.xlu2 %841 }
 0x15e   : > { %3645 = vst [vmem:[#allocation29_spill] sm:$0xff] %v2708_v22  ;;  %v2710_v48 = vpop.permute.xlu1 %801  ;;  %v2712_v62 = vpop.permute.xlu0 %809  ;;  %v2144_v22 = vmov 2  }
 0x15f   : > { %3646 = vst [vmem:[#allocation87_spill] sm:$0xff] %v2710_v48 }
 0x163   : > { %985 = vperm.xlu2 %2058, %v2520_v61  }
 0x164   : > { %981 = vperm.xlu1 %2057, %v3647_v28   ;;  %989 = vperm.xlu0 %2059, %v3648_v18  }
 0x165   : > { %v2717_v54 = vpop.permute.xlu2 %853 }
 0x166   : > { %3649 = vst [vmem:[#allocation41_spill] sm:$0xff] %v2717_v54  ;;  %v2719_v47 = vpop.permute.xlu1 %813  ;;  %v2721_v57 = vpop.permute.xlu0 %821  ;;  %v3653_v54 = vld [vmem:[#allocation5_spill] sm:$0xff] }
 0x167   : > { %3650 = vst [vmem:[#allocation88_spill] sm:$0xff] %v2721_v57 }
 0x16b   : > { %997 = vperm.xlu2 %2058, %v2532_v45  }
 0x16c   : > { %993 = vperm.xlu1 %2057, %v3651_v53   ;;  %2060 = vset.pattern.permute.xlu0 %v2144_v22 }
 0x16d   : > { %1130 = vperm.xlu0 %2060, %v2238_v3   ;;  %v2726_v48 = vpop.permute.xlu2 %865 }
 0x16e   : > { %3652 = vst [vmem:[#allocation40_spill] sm:$0xff] %v2726_v48  ;;  %v2728_v61 = vpop.permute.xlu1 %825  ;;  %v2730_v28 = vpop.permute.xlu0 %833  ;;  %v2772_v48 = vld [vmem:[%s3531_s2] ss:$0 sm:$0xff] }
 0x173   : > { %2062 = vset.pattern.permute.xlu2 %v2144_v22 }
 0x174   : > { %2061 = vset.pattern.permute.xlu1 %v2144_v22  ;;  %1138 = vperm.xlu2 %2062, %v2235_v2  }
 0x175   : > { %1134 = vperm.xlu1 %2061, %v3653_v54   ;;  %1150 = vperm.xlu0 %2060, %v2244_v4   ;;  %v2735_v45 = vpop.permute.xlu2 %877  ;;  %v2754_v4 = vld [vmem:[%s3530_s1] sm:$0x7] }
 0x176   : > { %v2737_v53 = vpop.permute.xlu1 %837  ;;  %v2739_v57 = vpop.permute.xlu0 %845  ;;  %v2765_v54 = vperm.slane %v2754_v4, 0 }
 0x177   : > { %3654 = vst [vmem:[#allocation5_spill] sm:$0xff] %v2739_v57 }
 0x178   : > { %v658_v57 = vmul.f32 %v2765_v54, %v2613_v41  ;;  %v661_v41 = vmul.f32 %v2765_v54, %v2622_v27  ;;  %v664_v27 = vmul.f32 %v2765_v54, %v2631_v30  ;;  %v667_v30 = vmul.f32 %v2765_v54, %v2638_v29 }
 0x17c   : > { %1146 = vperm.xlu2 %2062, %v2232_v1  }
 0x17d   : > { %1142 = vperm.xlu1 %2061, %v2247_v5   ;;  %1162 = vperm.xlu0 %2060, %v2256_v7   ;;  %v2744_v3 = vpop.permute.xlu2 %889 }
 0x17e   : > { %v2746_v22 = vpop.permute.xlu1 %849  ;;  %v2748_v2 = vpop.permute.xlu0 %857 }
 0x17f   : > { %3655 = vst [vmem:[#allocation89_spill] sm:$0xff] %v2746_v22 }
 0x180   : > { %3656 = vst [vmem:[#allocation90_spill] sm:$0xff] %v2748_v2 }
 0x184   : > { %1158 = vperm.xlu2 %2062, %v2259_v8   ;;  %v655_v8 = vmul.f32 %v2765_v54, %v2604_v51 }
 0x185   : > { %1154 = vperm.xlu1 %2061, %v2262_v9   ;;  %1174 = vperm.xlu0 %2060, %v2268_v10   ;;  %v2758_v1 = vpop.permute.xlu2 %901  ;;  %v2775_v9 = vperm.slane %v2754_v4, 1 }
 0x186   : > { %v2760_v5 = vpop.permute.xlu1 %861  ;;  %v2762_v7 = vpop.permute.xlu0 %869 }
 0x187   : > { %3657 = vst [vmem:[#allocation91_spill] sm:$0xff] %v2760_v5 }
 0x188   : > { %3658 = vst [vmem:[#allocation92_spill] sm:$0xff] %v2762_v7  ;;  %v722_v7 = vadd.f32 %v2772_v48, %v655_v8 }
 0x18c   : > { %1170 = vperm.xlu2 %2062, %v2271_v11  }
 0x18d   : > { %1166 = vperm.xlu1 %2061, %v2274_v12   ;;  %1258 = vperm.xlu0 %2060, %v2352_v31   ;;  %v914_v10 = vpop.permute.xlu2 %913  ;;  %v725_v12 = vadd.f32 %v2772_v48, %v658_v57 }
 0x18e   : > { %v1043_v5 = vmul.f32 %v2775_v9, %v914_v10  ;;  %v2782_v51 = vpop.permute.xlu1 %873  ;;  %v2784_v2 = vpop.permute.xlu0 %881 }
 0x190   : > { %v2786_v22 = vadd.f32 %v1043_v5, %v722_v7 }
 0x194   : > { %1182 = vperm.xlu2 %2062, %v2283_v14  }
 0x195   : > { %1178 = vperm.xlu1 %2061, %v2286_v15   ;;  %1262 = vperm.xlu0 %2060, %v2370_v36   ;;  %v926_v11 = vpop.permute.xlu2 %925  ;;  %v728_v15 = vadd.f32 %v2772_v48, %v661_v41  ;;  %v1593_v41 = vld [vmem:[%s3532_s3 + $0x78] sm:$0xff] }
 0x196   : > { %v1046_v31 = vmul.f32 %v2775_v9, %v926_v11  ;;  %v2795_v8 = vpop.permute.xlu1 %885  ;;  %v2797_v10 = vpop.permute.xlu0 %893  ;;  %1598 = vmatpush.msra.mxu0 %v1593_v41  ;;  %1962 = vmatpush.msra.mxu1 %v1593_v41 }
 0x197   : > { %1963 = vmatpush.msra.mxu2 %v1593_v41  ;;  %1964 = vmatpush.msra.mxu3 %v1593_v41  ;;  %v670_v41 = vmul.f32 %v2765_v54, %v2647_v32 }
 0x198   : > { %v2799_v5 = vadd.f32 %v1046_v31, %v725_v12 }
 0x19c   : > { %1194 = vperm.xlu2 %2062, %v2295_v17  }
 0x19d   : > { %1322 = vperm.xlu1 %2061, %v2448_v60   ;;  %1266 = vperm.xlu0 %2060, %v2367_v35   ;;  %v938_v14 = vpop.permute.xlu2 %937  ;;  %v731_v35 = vadd.f32 %v2772_v48, %v664_v27 }
 0x19e   : > { %v1049_v36 = vmul.f32 %v2775_v9, %v938_v14  ;;  %v2808_v57 = vpop.permute.xlu1 %897  ;;  %v2810_v7 = vpop.permute.xlu0 %905  ;;  %v1590_v14 = vld [vmem:[%s3532_s3 + $0x60] sm:$0xff] }
 0x1a0   : > { %v2812_v11 = vadd.f32 %v1049_v36, %v728_v15  ;;  %v734_v36 = vadd.f32 %v2772_v48, %v667_v30  ;;  %v737_v30 = vadd.f32 %v2772_v48, %v670_v41 }
 0x1a4   : > { %1198 = vperm.xlu2 %2062, %v2292_v16  }
 0x1a5   : > { %1326 = vperm.xlu1 %2061, %v2445_v59   ;;  %1270 = vperm.xlu0 %2060, %v2364_v34   ;;  %v950_v17 = vpop.permute.xlu2 %949  ;;  %v1592_v34 = vld [vmem:[%s3532_s3 + $0x70] sm:$0xff]  ;;  %v1591_v59 = vld [vmem:[%s3532_s3 + $0x68] sm:$0xff] }
 0x1a6   : > { %v1052_v60 = vmul.f32 %v2775_v9, %v950_v17  ;;  %v2821_v12 = vpop.permute.xlu1 %909  ;;  %v2823_v31 = vpop.permute.xlu0 %917  ;;  %1599 = vmatpush.msra.mxu0 %v1592_v34  ;;  %1965 = vmatpush.msra.mxu1 %v1592_v34 }
 0x1a7   : > { %1966 = vmatpush.msra.mxu2 %v1592_v34  ;;  %1967 = vmatpush.msra.mxu3 %v1592_v34  ;;  %v662_v34 = vmul.f32 %v2765_v54, %v2620_v63 }
 0x1a8   : > { %v2828_v16 = vadd.f32 %v1052_v60, %v731_v35  ;;  %1600 = vmatpush.msra.mxu0 %v1591_v59  ;;  %1968 = vmatpush.msra.mxu1 %v1591_v59  ;;  %v1589_v35 = vld [vmem:[%s3532_s3 + $0x58] sm:$0xff]  ;;  %v660_v60 = vmul.f32 %v2765_v54, %v2582_v6 }
 0x1a9   : > { %1969 = vmatpush.msra.mxu2 %v1591_v59  ;;  %1970 = vmatpush.msra.mxu3 %v1591_v59  ;;  %v1586_v59 = vld [vmem:[%s3532_s3 + $0x40] sm:$0xff] }
 0x1aa   : > { %1601 = vmatpush.msra.mxu0 %v1590_v14  ;;  %1971 = vmatpush.msra.mxu1 %v1590_v14  ;;  %v727_v32 = vadd.f32 %v2772_v48, %v660_v60 }
 0x1ab   : > { %1972 = vmatpush.msra.mxu2 %v1590_v14  ;;  %1973 = vmatpush.msra.mxu3 %v1590_v14 }
 0x1ac   : > { %1202 = vperm.xlu2 %2062, %v2310_v21   ;;  %1602 = vmatpush.msra.mxu0 %v1589_v35 }
 0x1ad   : > { %1330 = vperm.xlu1 %2061, %v2442_v58   ;;  %1274 = vperm.xlu0 %2060, %v2384_v40   ;;  %v962_v15 = vpop.permute.xlu2 %961  ;;  %v1588_v40 = vld [vmem:[%s3532_s3 + $0x50] sm:$0xff]  ;;  %v1587_v58 = vld [vmem:[%s3532_s3 + $0x48] sm:$0xff] }
 0x1ae   : > { %v1055_v29 = vmul.f32 %v2775_v9, %v962_v15  ;;  %v2846_v27 = vpop.permute.xlu1 %921  ;;  %v2848_v17 = vpop.permute.xlu0 %929  ;;  %1974 = vmatpush.msra.mxu1 %v1589_v35  ;;  %1975 = vmatpush.msra.mxu2 %v1589_v35 }
 0x1af   : > { %1603 = vmatpush.msra.mxu0 %v1588_v40  ;;  %1976 = vmatpush.msra.mxu3 %v1589_v35  ;;  %v1584_v35 = vld [vmem:[%s3532_s3 + $0x30] sm:$0xff] }
 0x1b0   : > { %v2853_v21 = vadd.f32 %v1055_v29, %v734_v36  ;;  %1977 = vmatpush.msra.mxu1 %v1588_v40  ;;  %1978 = vmatpush.msra.mxu2 %v1588_v40  ;;  %v1585_v36 = vld [vmem:[%s3532_s3 + $0x38] sm:$0xff] }
 0x1b1   : > { %1604 = vmatpush.msra.mxu0 %v1587_v58  ;;  %1979 = vmatpush.msra.mxu3 %v1588_v40  ;;  %v663_v40 = vmul.f32 %v2765_v54, %v2591_v56 }
 0x1b2   : > { %1980 = vmatpush.msra.mxu1 %v1587_v58  ;;  %1981 = vmatpush.msra.mxu2 %v1587_v58 }
 0x1b3   : > { %1605 = vmatpush.msra.mxu0 %v1586_v59  ;;  %1982 = vmatpush.msra.mxu3 %v1587_v58 }
 0x1b4   : > { %1206 = vperm.xlu2 %2062, %v2307_v20   ;;  %v729_v20 = vadd.f32 %v2772_v48, %v662_v34  ;;  %1983 = vmatpush.msra.mxu1 %v1586_v59  ;;  %v1583_v34 = vld [vmem:[%s3532_s3 + $0x28] sm:$0xff] }
 0x1b5   : > { %1334 = vperm.xlu1 %2061, %v2466_v49   ;;  %1278 = vperm.xlu0 %2060, %v2381_v39   ;;  %v974_v6 = vpop.permute.xlu2 %973 }
 0x1b6   : > { %v1058_v63 = vmul.f32 %v2775_v9, %v974_v6  ;;  %v934_v14 = vpop.permute.xlu1 %933  ;;  %v942_v15 = vpop.permute.xlu0 %941  ;;  %1606 = vmatpush.msra.mxu0 %v1585_v36  ;;  %1984 = vmatpush.msra.mxu2 %v1586_v59  ;;  %v673_v6 = vmul.f32 %v2765_v54, %v2656_v33  ;;  %v730_v33 = vadd.f32 %v2772_v48, %v663_v40  ;;  %v1579_v40 = vld [vmem:[%s3532_s3 + $0x8] sm:$0xff] }
 0x1b7   : > { %v1048_v49 = vmul.f32 %v2775_v9, %v934_v14  ;;  %v1050_v39 = vmul.f32 %v2775_v9, %v942_v15  ;;  %1986 = vmatpush.msra.mxu1 %v1585_v36  ;;  %1985 = vmatpush.msra.mxu3 %v1586_v59  ;;  %v1581_v59 = vld [vmem:[%s3532_s3 + $0x18] sm:$0xff] }
 0x1b8   : > { %v2882_v29 = vadd.f32 %v1058_v63, %v737_v30  ;;  %1607 = vmatpush.msra.mxu0 %v1584_v35  ;;  %v1582_v30 = vld [vmem:[%s3532_s3 + $0x20] sm:$0xff]  ;;  %1987 = vmatpush.msra.mxu2 %v1585_v36  ;;  %v740_v58 = vadd.f32 %v2772_v48, %v673_v6  ;;  %v676_v6 = vmul.f32 %v2765_v54, %v2663_v23 }
 0x1b9   : > { %v2887_v60 = vadd.f32 %v1048_v49, %v727_v32  ;;  %v2889_v41 = vadd.f32 %v1050_v39, %v729_v20  ;;  %v665_v32 = vmul.f32 %v2765_v54, %v2629_v26  ;;  %1989 = vmatpush.msra.mxu1 %v1584_v35  ;;  %1988 = vmatpush.msra.mxu3 %v1585_v36  ;;  %v1580_v20 = vld [vmem:[%s3532_s3 + $0x10] sm:$0xff] }
 0x1ba   : > { %1608 = vmatpush.msra.mxu0 %v1583_v34  ;;  %1990 = vmatpush.msra.mxu2 %v1584_v35  ;;  %v666_v36 = vmul.f32 %v2765_v54, %v2600_v13 }
 0x1bb   : > { %3659 = vst [vmem:[#allocation93_spill] sm:$0xff] %v2887_v60  ;;  %1992 = vmatpush.msra.mxu1 %v1583_v34  ;;  %1991 = vmatpush.msra.mxu3 %v1584_v35  ;;  %v743_v35 = vadd.f32 %v2772_v48, %v676_v6  ;;  %v3683_v60 = vld [vmem:[#allocation86_spill] sm:$0xff] }
 0x1bc   : > { %1210 = vperm.xlu2 %2062, %v2304_v19   ;;  %1609 = vmatpush.msra.mxu0 %v1582_v30  ;;  %v732_v19 = vadd.f32 %v2772_v48, %v665_v32  ;;  %v668_v32 = vmul.f32 %v2765_v54, %v2636_v25  ;;  %v733_v23 = vadd.f32 %v2772_v48, %v666_v36 }
 0x1bd   : > { %1338 = vperm.xlu1 %2061, %v2463_v55   ;;  %1282 = vperm.xlu0 %2060, %v2378_v38   ;;  %v986_v56 = vpop.permute.xlu2 %985 }
 0x1be   : > { %v1061_v26 = vmul.f32 %v2775_v9, %v986_v56  ;;  %v946_v63 = vpop.permute.xlu1 %945  ;;  %v954_v14 = vpop.permute.xlu0 %953  ;;  %1610 = vmatpush.msra.mxu0 %v1581_v59  ;;  %1993 = vmatpush.msra.mxu2 %v1583_v34  ;;  %v1578_v56 = vld [vmem:[%s3532_s3] sm:$0xff] }
 0x1bf   : > { %v1051_v55 = vmul.f32 %v2775_v9, %v946_v63  ;;  %v1053_v38 = vmul.f32 %v2775_v9, %v954_v14  ;;  %1995 = vmatpush.msra.mxu1 %v1582_v30  ;;  %1994 = vmatpush.msra.mxu3 %v1583_v34  ;;  %v735_v34 = vadd.f32 %v2772_v48, %v668_v32 }
 0x1c0   : > { %v2915_v15 = vadd.f32 %v1061_v26, %v740_v58  ;;  %1611 = vmatpush.msra.mxu0 %v1580_v20  ;;  %1996 = vmatpush.msra.mxu2 %v1582_v30  ;;  %v669_v14 = vmul.f32 %v2765_v54, %v2609_v50 }
 0x1c1   : > { %v2920_v49 = vadd.f32 %v1051_v55, %v730_v33  ;;  %v2922_v39 = vadd.f32 %v1053_v38, %v732_v19  ;;  %1998 = vmatpush.msra.mxu1 %v1581_v59  ;;  %1997 = vmatpush.msra.mxu3 %v1582_v30  ;;  %v3661_v19 = vld [vmem:[#allocation70_spill] sm:$0xff]  ;;  %v3662_v38 = vld [vmem:[#allocation7_spill] sm:$0xff] }
 0x1c2   : > { %1612 = vmatpush.msra.mxu0 %v1579_v40  ;;  %1999 = vmatpush.msra.mxu2 %v1581_v59  ;;  %v671_v55 = vmul.f32 %v2765_v54, %v3661_v19 }
 0x1c3   : > { %2001 = vmatpush.msra.mxu1 %v1580_v20  ;;  %2000 = vmatpush.msra.mxu3 %v1581_v59  ;;  %v736_v59 = vadd.f32 %v2772_v48, %v669_v14 }
 0x1c4   : > { %1214 = vperm.xlu2 %2062, %v2322_v24   ;;  %1613 = vmatpush.msra.mxu0 %v1578_v56  ;;  %v738_v50 = vadd.f32 %v2772_v48, %v671_v55 }
 0x1c5   : > { %1342 = vperm.xlu1 %2061, %v2460_v0   ;;  %1286 = vperm.xlu0 %2060, %v2398_v44   ;;  %v998_v13 = vpop.permute.xlu2 %997 }
 0x1c6   : > { %v1064_v25 = vmul.f32 %v2775_v9, %v998_v13  ;;  %v958_v33 = vpop.permute.xlu1 %957  ;;  %v966_v58 = vpop.permute.xlu0 %965  ;;  %2002 = vmatpush.msra.mxu2 %v1580_v20  ;;  %2004 = vmatpush.msra.mxu1 %v1579_v40 }
 0x1c7   : > { %v1054_v24 = vmul.f32 %v2775_v9, %v958_v33  ;;  %v1056_v26 = vmul.f32 %v2775_v9, %v966_v58  ;;  %2003 = vmatpush.msra.mxu3 %v1580_v20 }
 0x1c8   : > { %v2945_v44 = vadd.f32 %v1064_v25, %v743_v35  ;;  %2005 = vmatpush.msra.mxu2 %v1579_v40  ;;  %2007 = vmatpush.msra.mxu1 %v1578_v56  ;;  %v3664_v35 = vld [vmem:[#allocation72_spill] sm:$0xff]  ;;  %v3665_v25 = vld [vmem:[#allocation6_spill] sm:$0xff] }
 0x1c9   : > { %v2947_v0 = vadd.f32 %v1054_v24, %v733_v23  ;;  %v2949_v63 = vadd.f32 %v1056_v26, %v735_v34  ;;  %2006 = vmatpush.msra.mxu3 %v1579_v40  ;;  %v674_v40 = vmul.f32 %v2765_v54, %v3664_v35 }
 0x1ca   : > { %3660 = vst [vmem:[#allocation94_spill] sm:$0xff] %v2945_v44  ;;  %2008 = vmatpush.msra.mxu2 %v1578_v56 }
 0x1cb   : > { %2009 = vmatpush.msra.mxu3 %v1578_v56  ;;  %v741_v34 = vadd.f32 %v2772_v48, %v674_v40 }
 0x1cc   : > { %1218 = vperm.xlu2 %2062, %v3662_v38   ;;  %v3667_v38 = vld [vmem:[#allocation18_spill] sm:$0xff] }
 0x1cd   : > { %1346 = vperm.xlu1 %2061, %v2484_v37   ;;  %1290 = vperm.xlu0 %2060, %v2395_v43   ;;  %v3663_v37 = vld [vmem:[#allocation67_spill] sm:$0xff] }
 0x1ce   : > { %v970_v30 = vpop.permute.xlu1 %969  ;;  %v978_v36 = vpop.permute.xlu0 %977  ;;  %v672_v43 = vmul.f32 %v2765_v54, %v3663_v37  ;;  %v2994_v37 = vperm.slane %v2754_v4, 2 }
 0x1cf   : > { %v1057_v6 = vmul.f32 %v2775_v9, %v970_v30  ;;  %v1059_v32 = vmul.f32 %v2775_v9, %v978_v36  ;;  %v1139_v20 = vpop.permute.xlu2 %1138  ;;  %v3669_v36 = vld [vmem:[#allocation75_spill] sm:$0xff] }
 0x1d0   : > { %v739_v56 = vadd.f32 %v2772_v48, %v672_v43 }
 0x1d1   : > { %v2962_v13 = vadd.f32 %v1057_v6, %v736_v59  ;;  %v2964_v23 = vadd.f32 %v1059_v32, %v738_v50  ;;  %v1001_v59 = vmul.f32 %v2775_v9, %v3669_v36  ;;  %v3670_v50 = vld [vmem:[#allocation9_spill] sm:$0xff]  ;;  %v3671_v6 = vld [vmem:[#allocation15_spill] sm:$0xff] }
 0x1d4   : > { %1222 = vperm.xlu2 %2062, %v3665_v25  }
 0x1d5   : > { %1350 = vperm.xlu1 %2061, %v3639_v52   ;;  %1294 = vperm.xlu0 %2060, %v2392_v42   ;;  %v613_v52 = vmul.f32 %v2765_v54, %v3667_v38  ;;  %v3668_v42 = vld [vmem:[#allocation68_spill] sm:$0xff] }
 0x1d6   : > { %v982_v33 = vpop.permute.xlu1 %981  ;;  %v990_v58 = vpop.permute.xlu0 %989  ;;  %v675_v30 = vmul.f32 %v2765_v54, %v3668_v42 }
 0x1d7   : > { %v1060_v24 = vmul.f32 %v2775_v9, %v982_v33  ;;  %v1062_v26 = vmul.f32 %v2775_v9, %v990_v58  ;;  %v2977_v14 = vpop.permute.xlu2 %1146  ;;  %v680_v32 = vadd.f32 %v2772_v48, %v613_v52  ;;  %v3675_v52 = vld [vmem:[#allocation69_spill] sm:$0xff] }
 0x1d8   : > { %v742_v35 = vadd.f32 %v2772_v48, %v675_v30  ;;  %v1002_v42 = vmul.f32 %v2775_v9, %v3675_v52  ;;  %v3676_v30 = vld [vmem:[#allocation84_spill] sm:$0xff] }
 0x1d9   : > { %v2979_v19 = vadd.f32 %v1060_v24, %v739_v56  ;;  %v2981_v55 = vadd.f32 %v1062_v26, %v741_v34  ;;  %v1065_v58 = vadd.f32 %v1001_v59, %v680_v32  ;;  %v3674_v26 = vld [vmem:[#allocation27_spill] sm:$0xff]  ;;  %v1011_v36 = vmul.f32 %v2775_v9, %v3676_v30  ;;  %v3679_v32 = vld [vmem:[#allocation14_spill] sm:$0xff] }
 0x1da   : > { %v623_v4 = vmul.f32 %v2765_v54, %v3674_v26 }
 0x1db   : > { %3666 = vst [vmem:[#allocation70_spill] sm:$0xff] %v2981_v55  ;;  %v3699_v55 = vld [vmem:[#allocation60_spill] sm:$0xff] }
 0x1dc   : > { %1226 = vperm.xlu2 %2062, %v3670_v50   ;;  %v3677_v50 = vld [vmem:[#allocation8_spill] sm:$0xff] }
 0x1dd   : > { %1354 = vperm.xlu1 %2061, %v3643_v46   ;;  %1298 = vperm.xlu0 %2060, %v3671_v6   ;;  %v3673_v46 = vld [vmem:[#allocation22_spill] sm:$0xff]  ;;  %v3678_v6 = vld [vmem:[#allocation36_spill] sm:$0xff] }
 0x1de   : > { %v994_v43 = vpop.permute.xlu1 %993  ;;  %v614_v24 = vmul.f32 %v2765_v54, %v3673_v46 }
 0x1df   : > { %v1063_v40 = vmul.f32 %v2775_v9, %v994_v43  ;;  %v2998_v25 = vpop.permute.xlu2 %1158  ;;  %v1131_v33 = vpop.permute.xlu0 %1130 }
 0x1e0   : > { %v1386_v56 = vmul.f32 %v2994_v37, %v1131_v33  ;;  %v681_v43 = vadd.f32 %v2772_v48, %v614_v24 }
 0x1e1   : > { %v3001_v34 = vadd.f32 %v1063_v40, %v742_v35  ;;  %v690_v35 = vadd.f32 %v2772_v48, %v623_v4  ;;  %v3680_v40 = vld [vmem:[#allocation17_spill] sm:$0xff] }
 0x1e2   : > { %v1450_v38 = vadd.f32 %v1386_v56, %v1065_v58  ;;  %v615_v33 = vmul.f32 %v2765_v54, %v3680_v40  ;;  %v1066_v46 = vadd.f32 %v1002_v42, %v681_v43  ;;  %v1014_v42 = vmul.f32 %v2775_v9, %v3683_v60  ;;  %v2065_v43 = vld [vmem:[%s2229_s9 + $0xd0] sm:$0xff] }
 0x1e3   : > { %3672 = vst [vmem:[#allocation7_spill] sm:$0xff] %v3001_v34  ;;  %v1075_v26 = vadd.f32 %v1011_v36, %v690_v35  ;;  %v1388_v36 = vmul.f32 %v2994_v37, %v1139_v20 }
 0x1e4   : > { %1230 = vperm.xlu2 %2062, %v3677_v50   ;;  %v1514_v59 = vmax.f32 %v1450_v38, 0.0  ;;  %v3681_v50 = vld [vmem:[#allocation32_spill] sm:$0xff]  ;;  %v682_v40 = vadd.f32 %v2772_v48, %v615_v33  ;;  %v3686_v33 = vld [vmem:[#allocation21_spill] sm:$0xff] }
 0x1e5   : > { %1358 = vperm.xlu1 %2061, %v3678_v6   ;;  %1302 = vperm.xlu0 %2060, %v3679_v32   ;;  %v626_v24 = vmul.f32 %v2765_v54, %v3681_v50  ;;  %v3682_v6 = vld [vmem:[#allocation78_spill] sm:$0xff] }
 0x1e6   : > { %1614 = vmatmul.f32.vlgmr.msra.gmra.mxu0 %v1514_v59  ;;  %v1003_v4 = vmul.f32 %v2775_v9, %v3682_v6 }
 0x1e7   : > { %v1171_v58 = vpop.permute.xlu2 %1170  ;;  %v1135_v56 = vpop.permute.xlu1 %1134  ;;  %v693_v50 = vadd.f32 %v2772_v48, %v626_v24 }
 0x1e8   : > { %v1396_v52 = vmul.f32 %v2994_v37, %v1171_v58  ;;  %v1387_v38 = vmul.f32 %v2994_v37, %v1135_v56  ;;  %v3020_v30 = vpop.permute.xlu0 %1150  ;;  %v3684_v58 = vld [vmem:[#allocation35_spill] sm:$0xff]  ;;  %v3685_v56 = vld [vmem:[#allocation13_spill] sm:$0xff] }
 0x1e9   : > { %v1078_v60 = vadd.f32 %v1014_v42, %v693_v50 }
 0x1ea   : > { %v1451_v59 = vadd.f32 %v1387_v38, %v1066_v46  ;;  %v3026_v32 = vadd.f32 %v1396_v52, %v1075_v26  ;;  %v1067_v46 = vadd.f32 %v1003_v4, %v682_v40  ;;  %v616_v38 = vmul.f32 %v2765_v54, %v3686_v33 }
 0x1eb   : > { %v1017_v40 = vmul.f32 %v2775_v9, %v2712_v62 }
 0x1ec   : > { %1234 = vperm.xlu2 %2062, %v2065_v43   ;;  %v1515_v35 = vmax.f32 %v1451_v59, 0.0  ;;  %v1452_v59 = vadd.f32 %v1388_v36, %v1067_v46  ;;  %v3687_v43 = vld [vmem:[#allocation38_spill] sm:$0xff]  ;;  %v683_v4 = vadd.f32 %v2772_v48, %v616_v38  ;;  %v3690_v36 = vld [vmem:[#allocation19_spill] sm:$0xff] }
 0x1ed   : > { %1362 = vperm.xlu1 %2061, %v3684_v58   ;;  %1306 = vperm.xlu0 %2060, %v3685_v56   ;;  %v629_v58 = vmul.f32 %v2765_v54, %v3687_v43  ;;  %v3688_v56 = vld [vmem:[#allocation77_spill] sm:$0xff] }
 0x1ee   : > { %1617 = vmatmul.f32.gmra.mxu0 %v1515_v35  ;;  %v1004_v24 = vmul.f32 %v2775_v9, %v3688_v56  ;;  %v2066_v35 = vld [vmem:[%s2229_s9 + $0xd8] sm:$0xff]  ;;  %v1516_v50 = vmax.f32 %v1452_v59, 0.0 }
 0x1ef   : > { %v1183_v26 = vpop.permute.xlu2 %1182  ;;  %v1143_v52 = vpop.permute.xlu1 %1142  ;;  %v696_v46 = vadd.f32 %v2772_v48, %v629_v58  ;;  %v3693_v58 = vld [vmem:[#allocation71_spill] sm:$0xff] }
 0x1f0   : > { %v1399_v20 = vmul.f32 %v2994_v37, %v1183_v26  ;;  %v3039_v6 = vpop.permute.xlu0 %1162  ;;  %v1389_v42 = vmul.f32 %v2994_v37, %v1143_v52  ;;  %v3689_v26 = vld [vmem:[#allocation34_spill] sm:$0xff]  ;;  %v1068_v33 = vadd.f32 %v1004_v24, %v683_v4  ;;  %v1005_v24 = vmul.f32 %v2775_v9, %v3693_v58 }
 0x1f1   : > { %v1081_v62 = vadd.f32 %v1017_v40, %v696_v46  ;;  %v1018_v40 = vmul.f32 %v2775_v9, %v2719_v47  ;;  %v1390_v46 = vmul.f32 %v2994_v37, %v2977_v14  ;;  %v3695_v58 = vld [vmem:[#allocation42_spill] sm:$0xff]  ;;  %v3696_v47 = vld [vmem:[#allocation11_spill] sm:$0xff] }
 0x1f2   : > { %v3045_v44 = vadd.f32 %v1399_v20, %v1078_v60  ;;  %v3691_v60 = vld [vmem:[#allocation10_spill] sm:$0xff]  ;;  %v1453_v56 = vadd.f32 %v1389_v42, %v1068_v33 }
 0x1f3   : > { %v617_v38 = vmul.f32 %v2765_v54, %v3691_v60 }
 0x1f4   : > { %1238 = vperm.xlu2 %2062, %v2066_v35   ;;  %v3692_v35 = vld [vmem:[#allocation23_spill] sm:$0xff]  ;;  %v1517_v42 = vmax.f32 %v1453_v56, 0.0 }
 0x1f5   : > { %1366 = vperm.xlu1 %2061, %v3689_v26   ;;  %1310 = vperm.xlu0 %2060, %v3690_v36   ;;  %v630_v26 = vmul.f32 %v2765_v54, %v3692_v35  ;;  %v3694_v36 = vld [vmem:[#allocation46_spill] sm:$0xff]  ;;  %v1033_v35 = vmul.f32 %v2775_v9, %v2782_v51 }
 0x1f6   : > { %1620 = vmatmul.f32.gmra.mxu0 %v1516_v50  ;;  %v684_v50 = vadd.f32 %v2772_v48, %v617_v38  ;;  %v645_v60 = vmul.f32 %v2765_v54, %v3694_v36  ;;  %v618_v36 = vmul.f32 %v2765_v54, %v3696_v47 }
 0x1f7   : > { %v1195_v20 = vpop.permute.xlu2 %1194  ;;  %v3057_v43 = vpop.permute.xlu1 %1154  ;;  %v697_v38 = vadd.f32 %v2772_v48, %v630_v26 }
 0x1f8   : > { %v1402_v52 = vmul.f32 %v2994_v37, %v1195_v20  ;;  %v3060_v59 = vpop.permute.xlu0 %1174  ;;  %v2067_v20 = vld [vmem:[%s2229_s9 + $0xe0] sm:$0xff]  ;;  %v712_v14 = vadd.f32 %v2772_v48, %v645_v60  ;;  %v685_v47 = vadd.f32 %v2772_v48, %v618_v36  ;;  %v2070_v36 = vld [vmem:[%s2229_s9 + $0xf0] sm:$0xff] }
 0x1fa   : > { %v1466_v4 = vadd.f32 %v1402_v52, %v1081_v62  ;;  %v2068_v62 = vld [vmem:[%s2229_s9 + $0x170] sm:$0xff]  ;;  %v1069_v52 = vadd.f32 %v1005_v24, %v684_v50  ;;  %v3697_v24 = vld [vmem:[#allocation45_spill] sm:$0xff] }
 0x1fb   : > { %v631_v50 = vmul.f32 %v2765_v54, %v3697_v24  ;;  %v1034_v24 = vmul.f32 %v2775_v9, %v2735_v45 }
 0x1fc   : > { %1242 = vperm.xlu2 %2062, %v2067_v20   ;;  %v1530_v33 = vmax.f32 %v1466_v4, 0.0  ;;  %v1082_v4 = vadd.f32 %v1018_v40, %v697_v38  ;;  %v1454_v34 = vadd.f32 %v1390_v46, %v1069_v52  ;;  %v646_v40 = vmul.f32 %v2765_v54, %v3699_v55  ;;  %v2069_v52 = vld [vmem:[%s2229_s9 + $0xe8] sm:$0xff] }
 0x1fd   : > { %1370 = vperm.xlu1 %2061, %v3695_v58   ;;  %1314 = vperm.xlu0 %2060, %v2068_v62   ;;  %v1097_v62 = vadd.f32 %v1033_v35, %v712_v14  ;;  %v1391_v35 = vmul.f32 %v2994_v37, %v3020_v30  ;;  %v698_v55 = vadd.f32 %v2772_v48, %v631_v50 }
 0x1fe   : > { %1623 = vmatmul.f32.gmra.mxu0 %v1517_v42  ;;  %1662 = vmatmul.f32.vlgmr.msra.gmra.mxu1 %v1530_v33  ;;  %v3698_v42 = vld [vmem:[#allocation80_spill] sm:$0xff]  ;;  %v1518_v14 = vmax.f32 %v1454_v34, 0.0 }
 0x1ff   : > { %v1199_v20 = vpop.permute.xlu2 %1198  ;;  %v3082_v56 = vpop.permute.xlu1 %1166  ;;  %v1006_v33 = vmul.f32 %v2775_v9, %v3698_v42 }
 0x200   : > { %v1403_v51 = vmul.f32 %v2994_v37, %v1199_v20  ;;  %v1259_v58 = vpop.permute.xlu0 %1258  ;;  %v3700_v20 = vld [vmem:[#allocation82_spill] sm:$0xff] }
 0x201   : > { %v1418_v26 = vmul.f32 %v2994_v37, %v1259_v58  ;;  %v1019_v46 = vmul.f32 %v2775_v9, %v3700_v20 }
 0x202   : > { %v1467_v60 = vadd.f32 %v1403_v51, %v1082_v4  ;;  %v1070_v51 = vadd.f32 %v1006_v33, %v685_v47  ;;  %v3702_v47 = vld [vmem:[#allocation44_spill] sm:$0xff] }
 0x203   : > { %v1482_v38 = vadd.f32 %v1418_v26, %v1097_v62  ;;  %v3701_v62 = vld [vmem:[#allocation25_spill] sm:$0xff]  ;;  %v713_v26 = vadd.f32 %v2772_v48, %v646_v40  ;;  %v1083_v45 = vadd.f32 %v1019_v46, %v698_v55  ;;  %v632_v20 = vmul.f32 %v2765_v54, %v3702_v47  ;;  %v3705_v55 = vld [vmem:[#allocation88_spill] sm:$0xff] }
 0x204   : > { %1246 = vperm.xlu2 %2062, %v2069_v52   ;;  %v1531_v58 = vmax.f32 %v1467_v60, 0.0  ;;  %v619_v30 = vmul.f32 %v2765_v54, %v3701_v62  ;;  %v3703_v52 = vld [vmem:[#allocation73_spill] sm:$0xff] }
 0x205   : > { %1374 = vperm.xlu1 %2061, %v3648_v18   ;;  %1250 = vperm.xlu0 %2060, %v2070_v36   ;;  %v1546_v4 = vmax.f32 %v1482_v38, 0.0  ;;  %v1455_v38 = vadd.f32 %v1391_v35, %v1070_v51  ;;  %v1098_v50 = vadd.f32 %v1034_v24, %v713_v26  ;;  %v1007_v40 = vmul.f32 %v2775_v9, %v3703_v52  ;;  %v3704_v36 = vld [vmem:[#allocation59_spill] sm:$0xff] }
 0x206   : > { %1626 = vmatmul.f32.gmra.mxu0 %v1518_v14  ;;  %1665 = vmatmul.f32.gmra.mxu1 %v1531_v58  ;;  %v686_v58 = vadd.f32 %v2772_v48, %v619_v30  ;;  %v647_v46 = vmul.f32 %v2765_v54, %v3704_v36  ;;  %v1020_v35 = vmul.f32 %v2775_v9, %v3705_v55  ;;  %v2071_v51 = vld [vmem:[%s2229_s9 + $0x70] sm:$0xff]  ;;  %v2073_v30 = vld [vmem:[%s2229_s9 + $0x78] sm:$0xff] }
 0x207   : > { %1710 = vmatmul.f32.vlgmr.msra.gmra.mxu2 %v1546_v4  ;;  %v1203_v34 = vpop.permute.xlu2 %1202  ;;  %v3106_v42 = vpop.permute.xlu1 %1178  ;;  %v1392_v24 = vmul.f32 %v2994_v37, %v3057_v43  ;;  %v1519_v62 = vmax.f32 %v1455_v38, 0.0 }
 0x208   : > { %v1404_v18 = vmul.f32 %v2994_v37, %v1203_v34  ;;  %v1263_v60 = vpop.permute.xlu0 %1262  ;;  %v1035_v34 = vmul.f32 %v2775_v9, %v2784_v2  ;;  %v714_v47 = vadd.f32 %v2772_v48, %v647_v46 }
 0x209   : > { %v1419_v33 = vmul.f32 %v2994_v37, %v1263_v60  ;;  %v699_v60 = vadd.f32 %v2772_v48, %v632_v20 }
 0x20a   : > { %v1468_v14 = vadd.f32 %v1404_v18, %v1083_v45  ;;  %v2072_v45 = vld [vmem:[%s2229_s9 + $0x1f0] sm:$0xff]  ;;  %v1099_v20 = vadd.f32 %v1035_v34, %v714_v47 }
 0x20b   : > { %v1483_v4 = vadd.f32 %v1419_v33, %v1098_v50  ;;  %v1071_v50 = vadd.f32 %v1007_v40, %v686_v58  ;;  %v3706_v33 = vld [vmem:[#allocation24_spill] sm:$0xff]  ;;  %v3707_v58 = vld [vmem:[#allocation26_spill] sm:$0xff] }
 0x20c   : > { %1186 = vperm.xlu2 %2062, %v2071_v51   ;;  %v1532_v26 = vmax.f32 %v1468_v14, 0.0  ;;  %v620_v43 = vmul.f32 %v2765_v54, %v3706_v33  ;;  %v1084_v14 = vadd.f32 %v1020_v35, %v699_v60  ;;  %v633_v51 = vmul.f32 %v2765_v54, %v3707_v58 }
 0x20d   : > { %1378 = vperm.xlu1 %2061, %v2072_v45   ;;  %1190 = vperm.xlu0 %2060, %v2073_v30   ;;  %v1547_v18 = vmax.f32 %v1483_v4, 0.0  ;;  %v1456_v55 = vadd.f32 %v1392_v24, %v1071_v50  ;;  %v3709_v30 = vld [vmem:[#allocation49_spill] sm:$0xff]  ;;  %v1021_v24 = vmul.f32 %v2775_v9, %v2728_v61  ;;  %v1393_v60 = vmul.f32 %v2994_v37, %v2998_v25  ;;  %v2074_v50 = vld [vmem:[%s2229_s9 + $0x1f8] sm:$0xff] }
 0x20e   : > { %1629 = vmatmul.f32.gmra.mxu0 %v1519_v62  ;;  %1668 = vmatmul.f32.gmra.mxu1 %v1532_v26  ;;  %v3708_v62 = vld [vmem:[#allocation81_spill] sm:$0xff]  ;;  %v687_v45 = vadd.f32 %v2772_v48, %v620_v43  ;;  %v3710_v61 = vld [vmem:[#allocation12_spill] sm:$0xff] }
 0x20f   : > { %1713 = vmatmul.f32.gmra.mxu2 %v1547_v18  ;;  %v1207_v38 = vpop.permute.xlu2 %1206  ;;  %v1323_v52 = vpop.permute.xlu1 %1322  ;;  %v1008_v46 = vmul.f32 %v2775_v9, %v3708_v62  ;;  %v648_v18 = vmul.f32 %v2765_v54, %v3709_v30  ;;  %v1520_v33 = vmax.f32 %v1456_v55, 0.0 }
 0x210   : > { %v1405_v2 = vmul.f32 %v2994_v37, %v1207_v38  ;;  %v1434_v36 = vmul.f32 %v2994_v37, %v1323_v52  ;;  %v1267_v4 = vpop.permute.xlu0 %1266  ;;  %v2075_v52 = vld [vmem:[%s2229_s9 + $0x178] sm:$0xff] }
 0x211   : > { %v1420_v40 = vmul.f32 %v2994_v37, %v1267_v4  ;;  %v715_v25 = vadd.f32 %v2772_v48, %v648_v18 }
 0x212   : > { %v1469_v26 = vadd.f32 %v1405_v2, %v1084_v14  ;;  %v1498_v35 = vadd.f32 %v1434_v36, %v2812_v11  ;;  %v1036_v11 = vmul.f32 %v2775_v9, %v2795_v8  ;;  %v700_v14 = vadd.f32 %v2772_v48, %v633_v51 }
 0x213   : > { %v1484_v34 = vadd.f32 %v1420_v40, %v1099_v20  ;;  %v1072_v2 = vadd.f32 %v1008_v46, %v687_v45  ;;  %v621_v36 = vmul.f32 %v2765_v54, %v3710_v61  ;;  %v3712_v45 = vld [vmem:[#allocation83_spill] sm:$0xff]  ;;  %v2076_v61 = vld [vmem:[%s2229_s9 + $0xf8] sm:$0xff] }
 0x214   : > { %1382 = vperm.xlu2 %2062, %v2074_v50   ;;  %v1533_v47 = vmax.f32 %v1469_v26, 0.0  ;;  %v1562_v38 = vmax.f32 %v1498_v35, 0.0  ;;  %v1085_v20 = vadd.f32 %v1021_v24, %v700_v14  ;;  %v1100_v51 = vadd.f32 %v1036_v11, %v715_v25  ;;  %v3711_v26 = vld [vmem:[#allocation48_spill] sm:$0xff]  ;;  %v3713_v50 = vld [vmem:[#allocation62_spill] sm:$0xff] }
 0x215   : > { %1318 = vperm.xlu1 %2061, %v2075_v52   ;;  %v1548_v43 = vmax.f32 %v1484_v34, 0.0  ;;  %v1457_v62 = vadd.f32 %v1393_v60, %v1072_v2  ;;  %v634_v35 = vmul.f32 %v2765_v54, %v3711_v26  ;;  %v1009_v30 = vmul.f32 %v2775_v9, %v3712_v45 }
 0x216   : > { %1632 = vmatmul.f32.gmra.mxu0 %v1520_v33  ;;  %1671 = vmatmul.f32.gmra.mxu1 %v1533_v47  ;;  %v688_v24 = vadd.f32 %v2772_v48, %v621_v36  ;;  %v649_v33 = vmul.f32 %v2765_v54, %v3713_v50  ;;  %v3714_v47 = vld [vmem:[#allocation30_spill] sm:$0xff]  ;;  %v1394_v11 = vmul.f32 %v2994_v37, %v3039_v6 }
 0x217   : > { %1716 = vmatmul.f32.gmra.mxu2 %v1548_v43  ;;  %1758 = vmatmul.f32.vlgmr.msra.gmra.mxu3 %v1562_v38  ;;  %v1211_v4 = vpop.permute.xlu2 %1210  ;;  %v1327_v55 = vpop.permute.xlu1 %1326  ;;  %v1022_v60 = vmul.f32 %v2775_v9, %v3714_v47  ;;  %v1521_v52 = vmax.f32 %v1457_v62, 0.0  ;;  %v1037_v2 = vmul.f32 %v2775_v9, %v2744_v3  ;;  %v701_v36 = vadd.f32 %v2772_v48, %v634_v35  ;;  %v3716_v35 = vld [vmem:[#allocation47_spill] sm:$0xff] }
 0x218   : > { %v1406_v8 = vmul.f32 %v2994_v37, %v1211_v4  ;;  %v1435_v40 = vmul.f32 %v2994_v37, %v1327_v55  ;;  %v1271_v58 = vpop.permute.xlu0 %1270  ;;  %v1073_v25 = vadd.f32 %v1009_v30, %v688_v24  ;;  %v3715_v4 = vld [vmem:[#allocation28_spill] sm:$0xff]  ;;  %v635_v45 = vmul.f32 %v2765_v54, %v3716_v35  ;;  %v3717_v30 = vld [vmem:[#allocation74_spill] sm:$0xff] }
 0x219   : > { %v1421_v46 = vmul.f32 %v2994_v37, %v1271_v58  ;;  %v622_v55 = vmul.f32 %v2765_v54, %v3715_v4  ;;  %v1024_v35 = vmul.f32 %v2775_v9, %v2737_v53 }
 0x21a   : > { %v1470_v18 = vadd.f32 %v1406_v8, %v1085_v20  ;;  %v1499_v34 = vadd.f32 %v1435_v40, %v2889_v41  ;;  %v716_v20 = vadd.f32 %v2772_v48, %v649_v33  ;;  %v1086_v40 = vadd.f32 %v1022_v60, %v701_v36  ;;  %v3718_v33 = vld [vmem:[#allocation61_spill] sm:$0xff] }
 0x21b   : > { %v1485_v38 = vadd.f32 %v1421_v46, %v1100_v51  ;;  %v1458_v51 = vadd.f32 %v1394_v11, %v1073_v25  ;;  %v689_v50 = vadd.f32 %v2772_v48, %v622_v55  ;;  %v650_v47 = vmul.f32 %v2765_v54, %v3718_v33  ;;  %v3721_v33 = vld [vmem:[#allocation16_spill] sm:$0xff] }
 0x21c   : > { %v1534_v43 = vmax.f32 %v1470_v18, 0.0  ;;  %v1563_v14 = vmax.f32 %v1499_v34, 0.0  ;;  %v1101_v46 = vadd.f32 %v1037_v2, %v716_v20  ;;  %v1010_v18 = vmul.f32 %v2775_v9, %v3717_v30 }
 0x21d   : > { %1254 = vperm.xlu1 %2061, %v2076_v61   ;;  %v1549_v41 = vmax.f32 %v1485_v38, 0.0  ;;  %v1023_v60 = vmul.f32 %v2775_v9, %v2730_v28  ;;  %v1395_v11 = vmul.f32 %v2994_v37, %v3082_v56  ;;  %v1038_v2 = vmul.f32 %v2775_v9, %v2797_v10 }
 0x21e   : > { %1635 = vmatmul.f32.gmra.mxu0 %v1521_v52  ;;  %1674 = vmatmul.f32.gmra.mxu1 %v1534_v43  ;;  %v1522_v52 = vmax.f32 %v1458_v51, 0.0  ;;  %v717_v36 = vadd.f32 %v2772_v48, %v650_v47  ;;  %v3720_v51 = vld [vmem:[#allocation52_spill] sm:$0xff] }
 0x21f   : > { %1719 = vmatmul.f32.gmra.mxu2 %v1549_v41  ;;  %1761 = vmatmul.f32.gmra.mxu3 %v1563_v14  ;;  %v1215_v6 = vpop.permute.xlu2 %1214  ;;  %v1331_v8 = vpop.permute.xlu1 %1330  ;;  %v1074_v41 = vadd.f32 %v1010_v18, %v689_v50 }
 0x220   : > { %v1407_v3 = vmul.f32 %v2994_v37, %v1215_v6  ;;  %v1436_v58 = vmul.f32 %v2994_v37, %v1331_v8  ;;  %v1275_v62 = vpop.permute.xlu0 %1274  ;;  %v1102_v10 = vadd.f32 %v1038_v2, %v717_v36  ;;  %v3722_v2 = vld [vmem:[#allocation51_spill] sm:$0xff] }
 0x221   : > { %v1422_v26 = vmul.f32 %v2994_v37, %v1275_v62  ;;  %v1459_v6 = vadd.f32 %v1395_v11, %v1074_v41 }
 0x222   : > { %v1471_v34 = vadd.f32 %v1407_v3, %v1086_v40  ;;  %v1500_v24 = vadd.f32 %v1436_v58, %v2920_v49  ;;  %v702_v49 = vadd.f32 %v2772_v48, %v635_v45  ;;  %v3719_v40 = vld [vmem:[#allocation31_spill] sm:$0xff] }
 0x223   : > { %v1486_v38 = vadd.f32 %v1422_v26, %v1101_v46  ;;  %v636_v3 = vmul.f32 %v2765_v54, %v3719_v40  ;;  %v651_v46 = vmul.f32 %v2765_v54, %v3720_v51  ;;  %v1523_v45 = vmax.f32 %v1459_v6, 0.0 }
 0x224   : > { %v1535_v43 = vmax.f32 %v1471_v34, 0.0  ;;  %v1564_v14 = vmax.f32 %v1500_v24, 0.0  ;;  %v1087_v4 = vadd.f32 %v1023_v60, %v702_v49  ;;  %v1039_v34 = vmul.f32 %v2775_v9, %v2808_v57  ;;  %v3723_v49 = vld [vmem:[#allocation85_spill] sm:$0xff] }
 0x225   : > { %v1550_v61 = vmax.f32 %v1486_v38, 0.0  ;;  %v703_v50 = vadd.f32 %v2772_v48, %v636_v3  ;;  %v718_v47 = vadd.f32 %v2772_v48, %v651_v46  ;;  %v1012_v41 = vmul.f32 %v2775_v9, %v3723_v49  ;;  %v3726_v46 = vld [vmem:[#allocation33_spill] sm:$0xff] }
 0x226   : > { %1638 = vmatmul.f32.gmra.mxu0 %v1522_v52  ;;  %1677 = vmatmul.f32.gmra.mxu1 %v1535_v43 }
 0x227   : > { %1722 = vmatmul.f32.gmra.mxu2 %v1550_v61  ;;  %1764 = vmatmul.f32.gmra.mxu3 %v1564_v14  ;;  %v1219_v28 = vpop.permute.xlu2 %1218  ;;  %v1335_v25 = vpop.permute.xlu1 %1334  ;;  %v1088_v38 = vadd.f32 %v1024_v35, %v703_v50  ;;  %v1103_v43 = vadd.f32 %v1039_v34, %v718_v47  ;;  %v637_v61 = vmul.f32 %v2765_v54, %v3722_v2  ;;  %v3728_v47 = vld [vmem:[#allocation76_spill] sm:$0xff] }
 0x228   : > { %v1408_v56 = vmul.f32 %v2994_v37, %v1219_v28  ;;  %v1437_v55 = vmul.f32 %v2994_v37, %v1335_v25  ;;  %v1279_v20 = vpop.permute.xlu0 %1278 }
 0x229   : > { %v1423_v8 = vmul.f32 %v2994_v37, %v1279_v20 }
 0x22a   : > { %v1472_v58 = vadd.f32 %v1408_v56, %v1087_v4  ;;  %v1501_v62 = vadd.f32 %v1437_v55, %v2828_v16  ;;  %v624_v16 = vmul.f32 %v2765_v54, %v3721_v33  ;;  %v3724_v4 = vld [vmem:[#allocation64_spill] sm:$0xff]  ;;  %v3725_v55 = vld [vmem:[#allocation29_spill] sm:$0xff]  ;;  %v3727_v33 = vld [vmem:[#allocation50_spill] sm:$0xff] }
 0x22b   : > { %v1487_v26 = vadd.f32 %v1423_v8, %v1102_v10  ;;  %v652_v56 = vmul.f32 %v2765_v54, %v3724_v4  ;;  %v1025_v20 = vmul.f32 %v2775_v9, %v3725_v55  ;;  %v1397_v10 = vmul.f32 %v2994_v37, %v3060_v59 }
 0x22c   : > { %v1536_v30 = vmax.f32 %v1472_v58, 0.0  ;;  %v1565_v18 = vmax.f32 %v1501_v62, 0.0  ;;  %v691_v25 = vadd.f32 %v2772_v48, %v624_v16  ;;  %v1524_v8 = vmax.f32 %v3026_v32, 0.0  ;;  %v3231_v48 = vld [vmem:[%s3531_s2] ss:$0 sm:$0xff] }
 0x22d   : > { %v1551_v24 = vmax.f32 %v1487_v26, 0.0  ;;  %v1040_v58 = vmul.f32 %v2775_v9, %v2758_v1  ;;  %v704_v62 = vadd.f32 %v3231_v48, %v637_v61  ;;  %v625_v59 = vmul.f32 %v2765_v54, %v3726_v46  ;;  %v3732_v46 = vld [vmem:[#allocation55_spill] sm:$0xff] }
 0x22e   : > { %1641 = vmatmul.f32.gmra.mxu0 %v1523_v45  ;;  %1680 = vmatmul.f32.gmra.mxu1 %v1536_v30  ;;  %v1076_v51 = vadd.f32 %v1012_v41, %v691_v25  ;;  %v719_v32 = vadd.f32 %v3231_v48, %v652_v56  ;;  %v638_v16 = vmul.f32 %v2765_v54, %v3727_v33 }
 0x22f   : > { %1725 = vmatmul.f32.gmra.mxu2 %v1551_v24  ;;  %1767 = vmatmul.f32.gmra.mxu3 %v1565_v18  ;;  %v1223_v60 = vpop.permute.xlu2 %1222  ;;  %v1339_v53 = vpop.permute.xlu1 %1338  ;;  %v1089_v35 = vadd.f32 %v1025_v20, %v704_v62  ;;  %v1398_v61 = vmul.f32 %v2994_v37, %v3106_v42 }
 0x230   : > { %v1409_v11 = vmul.f32 %v2994_v37, %v1223_v60  ;;  %v1438_v52 = vmul.f32 %v2994_v37, %v1339_v53  ;;  %v1283_v57 = vpop.permute.xlu0 %1282  ;;  %v1461_v34 = vadd.f32 %v1397_v10, %v1076_v51  ;;  %v1104_v24 = vadd.f32 %v1040_v58, %v719_v32  ;;  %v3731_v58 = vld [vmem:[#allocation37_spill] sm:$0xff] }
 0x231   : > { %v1424_v14 = vmul.f32 %v2994_v37, %v1283_v57  ;;  %v1013_v60 = vmul.f32 %v2775_v9, %v3728_v47 }
 0x232   : > { %v1473_v36 = vadd.f32 %v1409_v11, %v1088_v38  ;;  %v1502_v28 = vadd.f32 %v1438_v52, %v2922_v39  ;;  %v692_v11 = vadd.f32 %v3231_v48, %v625_v59  ;;  %v3729_v52 = vld [vmem:[#allocation63_spill] sm:$0xff]  ;;  %v1525_v49 = vmax.f32 %v1461_v34, 0.0 }
 0x233   : > { %v1488_v6 = vadd.f32 %v1424_v14, %v1103_v43  ;;  %v653_v57 = vmul.f32 %v2765_v54, %v3729_v52  ;;  %v3730_v43 = vld [vmem:[#allocation5_spill] sm:$0xff]  ;;  %v654_v59 = vmul.f32 %v2765_v54, %v3732_v46  ;;  %v1044_v46 = vmul.f32 %v2775_v9, %v2823_v31 }
 0x234   : > { %v1537_v40 = vmax.f32 %v1473_v36, 0.0  ;;  %v1566_v3 = vmax.f32 %v1502_v28, 0.0  ;;  %v1026_v14 = vmul.f32 %v2775_v9, %v3730_v43  ;;  %v1041_v28 = vmul.f32 %v2775_v9, %v2810_v7 }
 0x235   : > { %v1552_v39 = vmax.f32 %v1488_v6, 0.0  ;;  %v1077_v4 = vadd.f32 %v1013_v60, %v692_v11  ;;  %v720_v56 = vadd.f32 %v3231_v48, %v653_v57  ;;  %v3734_v11 = vld [vmem:[#allocation54_spill] sm:$0xff] }
 0x236   : > { %1644 = vmatmul.f32.gmra.mxu0 %v1524_v8  ;;  %1683 = vmatmul.f32.gmra.mxu1 %v1537_v40  ;;  %v640_v52 = vmul.f32 %v2765_v54, %v3734_v11  ;;  %v1045_v11 = vmul.f32 %v2775_v9, %v2846_v27  ;;  %v3317_v27 = vld [vmem:[%s3533_s4] ss:$0 sm:$0xff] }
 0x237   : > { %1728 = vmatmul.f32.gmra.mxu2 %v1552_v39  ;;  %1770 = vmatmul.f32.gmra.mxu3 %v1566_v3  ;;  %v1227_v26 = vpop.permute.xlu2 %1226  ;;  %v1343_v1 = vpop.permute.xlu1 %1342  ;;  %v1462_v40 = vadd.f32 %v1398_v61, %v1077_v4  ;;  %v1105_v7 = vadd.f32 %v1041_v28, %v720_v56  ;;  %v639_v39 = vmul.f32 %v2765_v54, %v3731_v58  ;;  %v3738_v58 = vld [vmem:[#allocation90_spill] sm:$0xff] }
 0x238   : > { %v1410_v45 = vmul.f32 %v2994_v37, %v1227_v26  ;;  %v1439_v30 = vmul.f32 %v2994_v37, %v1343_v1  ;;  %v1287_v18 = vpop.permute.xlu0 %1286  ;;  %v3733_v26 = vld [vmem:[#allocation89_spill] sm:$0xff] }
 0x239   : > { %v1425_v50 = vmul.f32 %v2994_v37, %v1287_v18  ;;  %v1027_v1 = vmul.f32 %v2775_v9, %v3733_v26  ;;  %v1042_v18 = vmul.f32 %v2775_v9, %v2821_v12 }
 0x23a   : > { %v1474_v53 = vadd.f32 %v1410_v45, %v1089_v35  ;;  %v1503_v38 = vadd.f32 %v1439_v30, %v2947_v0  ;;  %v705_v0 = vadd.f32 %v3231_v48, %v638_v16  ;;  %v1526_v35 = vmax.f32 %v1462_v40, 0.0  ;;  %v3737_v40 = vld [vmem:[#allocation65_spill] sm:$0xff] }
 0x23b   : > { %v1489_v2 = vadd.f32 %v1425_v50, %v1104_v24  ;;  %v706_v24 = vadd.f32 %v3231_v48, %v639_v39  ;;  %v1029_v39 = vmul.f32 %v2775_v9, %v3738_v58 }
 0x23c   : > { %v1538_v41 = vmax.f32 %v1474_v53, 0.0  ;;  %v1567_v36 = vmax.f32 %v1503_v38, 0.0  ;;  %v1090_v6 = vadd.f32 %v1026_v14, %v705_v0 }
 0x23d   : > { %v1553_v25 = vmax.f32 %v1489_v2, 0.0  ;;  %v1091_v16 = vadd.f32 %v1027_v1, %v706_v24  ;;  %v3735_v2 = vld [vmem:[#allocation41_spill] sm:$0xff] }
 0x23e   : > { %1647 = vmatmul.f32.gmra.mxu0 %v1525_v49  ;;  %1686 = vmatmul.f32.gmra.mxu1 %v1538_v41  ;;  %v1028_v61 = vmul.f32 %v2775_v9, %v3735_v2  ;;  %v1527_v49 = vmax.f32 %v3045_v44, 0.0  ;;  %v3736_v44 = vld [vmem:[#allocation53_spill] sm:$0xff] }
 0x23f   : > { %1731 = vmatmul.f32.gmra.mxu2 %v1553_v25  ;;  %1773 = vmatmul.f32.gmra.mxu3 %v1567_v36  ;;  %v1231_v55 = vpop.permute.xlu2 %1230  ;;  %v1347_v20 = vpop.permute.xlu1 %1346  ;;  %v707_v25 = vadd.f32 %v3231_v48, %v640_v52 }
 0x240   : > { %v1411_v42 = vmul.f32 %v2994_v37, %v1231_v55  ;;  %v1440_v10 = vmul.f32 %v2994_v37, %v1347_v20  ;;  %v1291_v8 = vpop.permute.xlu0 %1290 }
 0x241   : > { %v1426_v3 = vmul.f32 %v2994_v37, %v1291_v8  ;;  %v1092_v56 = vadd.f32 %v1028_v61, %v707_v25  ;;  %v3742_v25 = vld [vmem:[#allocation20_spill] sm:$0xff] }
 0x242   : > { %v1475_v62 = vadd.f32 %v1411_v42, %v1090_v6  ;;  %v1504_v51 = vadd.f32 %v1440_v10, %v2853_v21  ;;  %v721_v21 = vadd.f32 %v3231_v48, %v654_v59  ;;  %v641_v42 = vmul.f32 %v2765_v54, %v3736_v44 }
 0x243   : > { %v1490_v32 = vadd.f32 %v1426_v3, %v1105_v7  ;;  %v656_v7 = vmul.f32 %v2765_v54, %v3737_v40 }
 0x244   : > { %v1539_v45 = vmax.f32 %v1475_v62, 0.0  ;;  %v1568_v30 = vmax.f32 %v1504_v51, 0.0  ;;  %v1106_v38 = vadd.f32 %v1042_v18, %v721_v21 }
 0x245   : > { %v1554_v34 = vmax.f32 %v1490_v32, 0.0  ;;  %v708_v32 = vadd.f32 %v3231_v48, %v641_v42  ;;  %v723_v26 = vadd.f32 %v3231_v48, %v656_v7 }
 0x246   : > { %1650 = vmatmul.f32.gmra.mxu0 %v1526_v35  ;;  %1689 = vmatmul.f32.gmra.mxu1 %v1539_v45 }
 0x247   : > { %1734 = vmatmul.f32.gmra.mxu2 %v1554_v34  ;;  %1776 = vmatmul.f32.gmra.mxu3 %v1568_v30  ;;  %v1235_v50 = vpop.permute.xlu2 %1234  ;;  %v1351_v33 = vpop.permute.xlu1 %1350  ;;  %v1093_v35 = vadd.f32 %v1029_v39, %v708_v32  ;;  %v1108_v18 = vadd.f32 %v1044_v46, %v723_v26  ;;  %v3739_v34 = vld [vmem:[#allocation43_spill] sm:$0xff]  ;;  %v3744_v32 = vld [vmem:[#allocation66_spill] sm:$0xff] }
 0x248   : > { %v1412_v47 = vmul.f32 %v2994_v37, %v1235_v50  ;;  %v1441_v60 = vmul.f32 %v2994_v37, %v1351_v33  ;;  %v1295_v53 = vpop.permute.xlu0 %1294  ;;  %v642_v24 = vmul.f32 %v2765_v54, %v3739_v34  ;;  %v3740_v33 = vld [vmem:[#allocation58_spill] sm:$0xff]  ;;  %v659_v26 = vmul.f32 %v2765_v54, %v3744_v32 }
 0x249   : > { %v1427_v12 = vmul.f32 %v2994_v37, %v1295_v53 }
 0x24a   : > { %v1476_v57 = vadd.f32 %v1412_v47, %v1091_v16  ;;  %v1505_v43 = vadd.f32 %v1441_v60, %v2949_v63  ;;  %v657_v16 = vmul.f32 %v2765_v54, %v3740_v33  ;;  %v3741_v60 = vld [vmem:[#allocation91_spill] sm:$0xff]  ;;  %v3745_v33 = vld [vmem:[#allocation57_spill] sm:$0xff] }
 0x24b   : > { %v1491_v14 = vadd.f32 %v1427_v12, %v1106_v38  ;;  %v1030_v53 = vmul.f32 %v2775_v9, %v3741_v60 }
 0x24c   : > { %v1540_v41 = vmax.f32 %v1476_v57, 0.0  ;;  %v1569_v36 = vmax.f32 %v1505_v43, 0.0  ;;  %v709_v57 = vadd.f32 %v3231_v48, %v642_v24 }
 0x24d   : > { %v1555_v28 = vmax.f32 %v1491_v14, 0.0 }
 0x24e   : > { %1653 = vmatmul.f32.gmra.mxu0 %v1527_v49  ;;  %1692 = vmatmul.f32.gmra.mxu1 %v1540_v41  ;;  %v1094_v2 = vadd.f32 %v1030_v53, %v709_v57 }
 0x24f   : > { %1737 = vmatmul.f32.gmra.mxu2 %v1555_v28  ;;  %1779 = vmatmul.f32.gmra.mxu3 %v1569_v36  ;;  %v1239_v0 = vpop.permute.xlu2 %1238  ;;  %v1355_v4 = vpop.permute.xlu1 %1354 }
 0x250   : > { %v1413_v63 = vmul.f32 %v2994_v37, %v1239_v0  ;;  %v1442_v55 = vmul.f32 %v2994_v37, %v1355_v4  ;;  %v1299_v20 = vpop.permute.xlu0 %1298  ;;  %v627_v0 = vmul.f32 %v2765_v54, %v3742_v25 }
 0x251   : > { %v1428_v6 = vmul.f32 %v2994_v37, %v1299_v20  ;;  %v3743_v20 = vld [vmem:[#allocation87_spill] sm:$0xff] }
 0x252   : > { %v1477_v10 = vadd.f32 %v1413_v63, %v1092_v56  ;;  %v1506_v8 = vadd.f32 %v1442_v55, %v2962_v13  ;;  %v694_v40 = vadd.f32 %v3231_v48, %v627_v0 }
 0x253   : > { %v1492_v3 = vadd.f32 %v1428_v6, %v2786_v22  ;;  %v1015_v6 = vmul.f32 %v2775_v9, %v3743_v20 }
 0x254   : > { %v1541_v62 = vmax.f32 %v1477_v10, 0.0  ;;  %v1570_v51 = vmax.f32 %v1506_v8, 0.0 }
 0x255   : > { %v1556_v59 = vmax.f32 %v1492_v3, 0.0  ;;  %v1079_v3 = vadd.f32 %v1015_v6, %v694_v40 }
 0x256   : > { %1695 = vmatmul.f32.gmra.mxu1 %v1541_v62 }
 0x257   : > { %1740 = vmatmul.f32.gmra.mxu2 %v1556_v59  ;;  %1782 = vmatmul.f32.gmra.mxu3 %v1570_v51  ;;  %v1243_v13 = vpop.permute.xlu2 %1242  ;;  %v1359_v1 = vpop.permute.xlu1 %1358 }
 0x258   : > { %v1414_v22 = vmul.f32 %v2994_v37, %v1243_v13  ;;  %v1443_v45 = vmul.f32 %v2994_v37, %v1359_v1  ;;  %v1303_v30 = vpop.permute.xlu0 %1302 }
 0x259   : > { %v1429_v31 = vmul.f32 %v2994_v37, %v1303_v30  ;;  %v1047_v30 = vmul.f32 %v2775_v9, %v2848_v17  ;;  %v643_v17 = vmul.f32 %v2765_v54, %v3745_v33 }
 0x25a   : > { %v1478_v21 = vadd.f32 %v1414_v22, %v1093_v35  ;;  %v1507_v50 = vadd.f32 %v1443_v45, %v2882_v29  ;;  %v724_v29 = vadd.f32 %v3231_v48, %v657_v16 }
 0x25b   : > { %v1493_v47 = vadd.f32 %v1429_v31, %v1108_v18  ;;  %v726_v31 = vadd.f32 %v3231_v48, %v659_v26 }
 0x25c   : > { %v1542_v38 = vmax.f32 %v1478_v21, 0.0  ;;  %v1571_v12 = vmax.f32 %v1507_v50, 0.0  ;;  %v1109_v36 = vadd.f32 %v1045_v11, %v724_v29 }
 0x25d   : > { %v1557_v52 = vmax.f32 %v1493_v47, 0.0 }
 0x25e   : > { %1698 = vmatmul.f32.gmra.mxu1 %v1542_v38  ;;  %v3746_v38 = vld [vmem:[#allocation40_spill] sm:$0xff] }
 0x25f   : > { %1743 = vmatmul.f32.gmra.mxu2 %v1557_v52  ;;  %1785 = vmatmul.f32.gmra.mxu3 %v1571_v12  ;;  %v1247_v43 = vpop.permute.xlu2 %1246  ;;  %v1363_v14 = vpop.permute.xlu1 %1362  ;;  %v1031_v12 = vmul.f32 %v2775_v9, %v3746_v38  ;;  %v710_v52 = vadd.f32 %v3231_v48, %v643_v17 }
 0x260   : > { %v1415_v61 = vmul.f32 %v2994_v37, %v1247_v43  ;;  %v1444_v49 = vmul.f32 %v2994_v37, %v1363_v14  ;;  %v1307_v41 = vpop.permute.xlu0 %1306 }
 0x261   : > { %v1430_v28 = vmul.f32 %v2994_v37, %v1307_v41  ;;  %v1095_v43 = vadd.f32 %v1031_v12, %v710_v52 }
 0x262   : > { %v1479_v4 = vadd.f32 %v1415_v61, %v1094_v2  ;;  %v1508_v56 = vadd.f32 %v1444_v49, %v2964_v23  ;;  %v3747_v2 = vld [vmem:[#allocation70_spill] sm:$0xff]  ;;  %v3748_v49 = vld [vmem:[#allocation39_spill] sm:$0xff] }
 0x263   : > { %v1615_v63 = vpop.f32.mrf.mxu0  ;;  %v1494_v55 = vadd.f32 %v1430_v28, %v1109_v36  ;;  %v628_v41 = vmul.f32 %v2765_v54, %v3748_v49 }
 0x264   : > { %v1616_v44 = vadd.f32 %v3317_v27, %v1615_v63  ;;  %v1543_v42 = vmax.f32 %v1479_v4, 0.0  ;;  %v1572_v10 = vmax.f32 %v1508_v56, 0.0  ;;  %v3749_v63 = vld [vmem:[#allocation79_spill] sm:$0xff] }
 0x265   : > { %v1558_v8 = vmax.f32 %v1494_v55, 0.0  ;;  %v1016_v55 = vmul.f32 %v2775_v9, %v3749_v63  ;;  %v695_v6 = vadd.f32 %v3231_v48, %v628_v41 }
 0x266   : > { %1807 = vst [vmem:[%s3327_s30] sm:$0xff] %v1616_v44  ;;  %1701 = vmatmul.f32.gmra.mxu1 %v1543_v42 }
 0x267   : > { %1746 = vmatmul.f32.gmra.mxu2 %v1558_v8  ;;  %1788 = vmatmul.f32.gmra.mxu3 %v1572_v10  ;;  %v1187_v23 = vpop.permute.xlu2 %1186  ;;  %v1367_v7 = vpop.permute.xlu1 %1366  ;;  %v1080_v8 = vadd.f32 %v1016_v55, %v695_v6 }
 0x268   : > { %v1400_v58 = vmul.f32 %v2994_v37, %v1187_v23  ;;  %v1445_v39 = vmul.f32 %v2994_v37, %v1367_v7  ;;  %v1311_v62 = vpop.permute.xlu0 %1310  ;;  %v3750_v7 = vld [vmem:[#allocation7_spill] sm:$0xff] }
 0x269   : > { %v1431_v51 = vmul.f32 %v2994_v37, %v1311_v62 }
 0x26a   : > { %v1464_v46 = vadd.f32 %v1400_v58, %v1079_v3  ;;  %v1509_v59 = vadd.f32 %v1445_v39, %v2979_v19 }
 0x26b   : > { %v1618_v13 = vpop.f32.mrf.mxu0  ;;  %v1495_v1 = vadd.f32 %v1431_v51, %v2799_v5  ;;  %v1111_v5 = vadd.f32 %v1047_v30, %v726_v31  ;;  %v3753_v31 = vld [vmem:[#allocation93_spill] sm:$0xff] }
 0x26c   : > { %v1619_v35 = vadd.f32 %v3317_v27, %v1618_v13  ;;  %v1528_v22 = vmax.f32 %v1464_v46, 0.0  ;;  %v1573_v45 = vmax.f32 %v1509_v59, 0.0 }
 0x26d   : > { %v1559_v18 = vmax.f32 %v1495_v1, 0.0 }
 0x26e   : > { %1808 = vst [vmem:[%s3327_s30 + $0x8] sm:$0xff] %v1619_v35  ;;  %1656 = vmatmul.f32.gmra.mxu0 %v1528_v22  ;;  %v3751_v35 = vld [vmem:[#allocation94_spill] sm:$0xff] }
 0x26f   : > { %1749 = vmatmul.f32.gmra.mxu2 %v1559_v18  ;;  %1791 = vmatmul.f32.gmra.mxu3 %v1573_v45  ;;  %v1371_v19 = vpop.permute.xlu1 %1370  ;;  %v1383_v23 = vpop.permute.xlu2 %1382  ;;  %v3752_v45 = vld [vmem:[#allocation56_spill] sm:$0xff] }
 0x270   : > { %v1446_v34 = vmul.f32 %v2994_v37, %v1371_v19  ;;  %v1315_v24 = vpop.permute.xlu0 %1314  ;;  %v1449_v32 = vmul.f32 %v2994_v37, %v1383_v23  ;;  %v644_v30 = vmul.f32 %v2765_v54, %v3752_v45 }
 0x271   : > { %v1432_v21 = vmul.f32 %v2994_v37, %v1315_v24 }
 0x272   : > { %v1510_v50 = vadd.f32 %v1446_v34, %v2915_v15  ;;  %v1513_v22 = vadd.f32 %v1449_v32, %v3751_v35 }
 0x273   : > { %v1621_v16 = vpop.f32.mrf.mxu0  ;;  %v1496_v47 = vadd.f32 %v1432_v21, %v1111_v5  ;;  %v3754_v21 = vld [vmem:[#allocation92_spill] sm:$0xff] }
 0x274   : > { %v1622_v60 = vadd.f32 %v3317_v27, %v1621_v16  ;;  %v1574_v53 = vmax.f32 %v1510_v50, 0.0  ;;  %v1032_v50 = vmul.f32 %v2775_v9, %v3754_v21 }
 0x275   : > { %v1560_v11 = vmax.f32 %v1496_v47, 0.0  ;;  %v1577_v47 = vmax.f32 %v1513_v22, 0.0 }
 0x276   : > { %1809 = vst [vmem:[%s3327_s30 + $0x10] sm:$0xff] %v1622_v60  ;;  %v711_v60 = vadd.f32 %v3231_v48, %v644_v30 }
 0x277   : > { %1752 = vmatmul.f32.gmra.mxu2 %v1560_v11  ;;  %1794 = vmatmul.f32.gmra.mxu3 %v1574_v53  ;;  %v1375_v57 = vpop.permute.xlu1 %1374 }
 0x278   : > { %v1447_v15 = vmul.f32 %v2994_v37, %v1375_v57  ;;  %v1251_v29 = vpop.permute.xlu0 %1250  ;;  %v1096_v53 = vadd.f32 %v1032_v50, %v711_v60 }
 0x279   : > { %v1416_v14 = vmul.f32 %v2994_v37, %v1251_v29 }
 0x27a   : > { %v1511_v61 = vadd.f32 %v1447_v15, %v3747_v2 }
 0x27b   : > { %v1624_v36 = vpop.f32.mrf.mxu0  ;;  %v1663_v28 = vpop.f32.mrf.mxu1  ;;  %v1480_v25 = vadd.f32 %v1416_v14, %v1095_v43 }
 0x27c   : > { %v1625_v0 = vadd.f32 %v3317_v27, %v1624_v36  ;;  %v1664_v4 = vadd.f32 %v3317_v27, %v1663_v28  ;;  %v1575_v56 = vmax.f32 %v1511_v61, 0.0 }
 0x27d   : > { %v1544_v20 = vmax.f32 %v1480_v25, 0.0 }
 0x27e   : > { %1810 = vst [vmem:[%s3327_s30 + $0x18] sm:$0xff] %v1625_v0 }
 0x27f   : > { %1823 = vst [vmem:[%s3327_s30 + $0x80] sm:$0xff] %v1664_v4  ;;  %1704 = vmatmul.f32.gmra.mxu1 %v1544_v20  ;;  %1797 = vmatmul.f32.gmra.mxu3 %v1575_v56  ;;  %v1379_v44 = vpop.permute.xlu1 %1378 }
 0x280   : > { %v1448_v42 = vmul.f32 %v2994_v37, %v1379_v44  ;;  %v1191_v10 = vpop.permute.xlu0 %1190 }
 0x281   : > { %v1401_v40 = vmul.f32 %v2994_v37, %v1191_v10 }
 0x282   : > { %v1512_v3 = vadd.f32 %v1448_v42, %v3750_v7 }
 0x283   : > { %v1627_v58 = vpop.f32.mrf.mxu0  ;;  %v1666_v39 = vpop.f32.mrf.mxu1  ;;  %v1465_v62 = vadd.f32 %v1401_v40, %v1080_v8 }
 0x284   : > { %v1628_v51 = vadd.f32 %v3317_v27, %v1627_v58  ;;  %v1667_v46 = vadd.f32 %v3317_v27, %v1666_v39  ;;  %v1576_v59 = vmax.f32 %v1512_v3, 0.0 }
 0x285   : > { %v1529_v26 = vmax.f32 %v1465_v62, 0.0 }
 0x286   : > { %1811 = vst [vmem:[%s3327_s30 + $0x20] sm:$0xff] %v1628_v51 }
 0x287   : > { %1824 = vst [vmem:[%s3327_s30 + $0x88] sm:$0xff] %v1667_v46  ;;  %1659 = vmatmul.f32.gmra.mxu0 %v1529_v26  ;;  %1800 = vmatmul.f32.gmra.mxu3 %v1576_v59  ;;  %v1319_v13 = vpop.permute.xlu1 %1318 }
 0x288   : > { %v1433_v1 = vmul.f32 %v2994_v37, %v1319_v13 }
 0x28a   : > { %v1711_v18 = vpop.f32.mrf.mxu2  ;;  %v1497_v19 = vadd.f32 %v1433_v1, %v3753_v31 }
 0x28b   : > { %v1712_v34 = vadd.f32 %v3317_v27, %v1711_v18  ;;  %v1630_v24 = vpop.f32.mrf.mxu0  ;;  %v1669_v5 = vpop.f32.mrf.mxu1 }
 0x28c   : > { %v1631_v33 = vadd.f32 %v3317_v27, %v1630_v24  ;;  %v1670_v17 = vadd.f32 %v3317_v27, %v1669_v5  ;;  %v1561_v16 = vmax.f32 %v1497_v19, 0.0 }
 0x28d   : > { %1839 = vst [vmem:[%s3327_s30 + $0x100] sm:$0xff] %v1712_v34 }
 0x28e   : > { %1812 = vst [vmem:[%s3327_s30 + $0x28] sm:$0xff] %v1631_v33  ;;  %1755 = vmatmul.f32.gmra.mxu2 %v1561_v16 }
 0x28f   : > { %1825 = vst [vmem:[%s3327_s30 + $0x90] sm:$0xff] %v1670_v17  ;;  %1803 = vmatmul.f32.gmra.mxu3 %v1577_v47  ;;  %v1255_v54 = vpop.permute.xlu1 %1254 }
 0x290   : > { %v1417_v9 = vmul.f32 %v2994_v37, %v1255_v54 }
 0x292   : > { %v1714_v38 = vpop.f32.mrf.mxu2  ;;  %v1481_v12 = vadd.f32 %v1417_v9, %v1096_v53 }
 0x293   : > { %v1715_v11 = vadd.f32 %v3317_v27, %v1714_v38  ;;  %v1633_v52 = vpop.f32.mrf.mxu0  ;;  %v1672_v57 = vpop.f32.mrf.mxu1 }
 0x294   : > { %v1634_v48 = vadd.f32 %v3317_v27, %v1633_v52  ;;  %v1673_v15 = vadd.f32 %v3317_v27, %v1672_v57  ;;  %v1545_v29 = vmax.f32 %v1481_v12, 0.0 }
 0x295   : > { %1840 = vst [vmem:[%s3327_s30 + $0x108] sm:$0xff] %v1715_v11 }
 0x296   : > { %1813 = vst [vmem:[%s3327_s30 + $0x30] sm:$0xff] %v1634_v48  ;;  %1707 = vmatmul.f32.gmra.mxu1 %v1545_v29 }
 0x297   : > { %1826 = vst [vmem:[%s3327_s30 + $0x98] sm:$0xff] %v1673_v15 }
 0x29a   : > { %v1717_v37 = vpop.f32.mrf.mxu2  ;;  %v1759_v43 = vpop.f32.mrf.mxu3 }
 0x29b   : > { %v1718_v14 = vadd.f32 %v3317_v27, %v1717_v37  ;;  %v1760_v2 = vadd.f32 %v3317_v27, %v1759_v43  ;;  %v1636_v61 = vpop.f32.mrf.mxu0  ;;  %v1675_v49 = vpop.f32.mrf.mxu1 }
 0x29c   : > { %v1637_v41 = vadd.f32 %v3317_v27, %v1636_v61  ;;  %v1676_v36 = vadd.f32 %v3317_v27, %v1675_v49 }
 0x29d   : > { %1841 = vst [vmem:[%s3327_s30 + $0x110] sm:$0xff] %v1718_v14 }
 0x29e   : > { %1855 = vst [vmem:[%s3327_s30 + $0x180] sm:$0xff] %v1760_v2 }
 0x29f   : > { %1814 = vst [vmem:[%s3327_s30 + $0x38] sm:$0xff] %v1637_v41 }
 0x2a0   : > { %1827 = vst [vmem:[%s3327_s30 + $0xa0] sm:$0xff] %v1676_v36 }
 0x2a2   : > { %v1720_v28 = vpop.f32.mrf.mxu2  ;;  %v1762_v25 = vpop.f32.mrf.mxu3 }
 0x2a3   : > { %v1721_v0 = vadd.f32 %v3317_v27, %v1720_v28  ;;  %v1763_v4 = vadd.f32 %v3317_v27, %v1762_v25  ;;  %v1639_v56 = vpop.f32.mrf.mxu0  ;;  %v1678_v63 = vpop.f32.mrf.mxu1 }
 0x2a4   : > { %v1640_v55 = vadd.f32 %v3317_v27, %v1639_v56  ;;  %v1679_v20 = vadd.f32 %v3317_v27, %v1678_v63 }
 0x2a5   : > { %1842 = vst [vmem:[%s3327_s30 + $0x118] sm:$0xff] %v1721_v0 }
 0x2a6   : > { %1856 = vst [vmem:[%s3327_s30 + $0x188] sm:$0xff] %v1763_v4 }
 0x2a7   : > { %1815 = vst [vmem:[%s3327_s30 + $0x40] sm:$0xff] %v1640_v55 }
 0x2a8   : > { %1828 = vst [vmem:[%s3327_s30 + $0xa8] sm:$0xff] %v1679_v20 }
 0x2aa   : > { %v1723_v6 = vpop.f32.mrf.mxu2  ;;  %v1765_v44 = vpop.f32.mrf.mxu3 }
 0x2ab   : > { %v1724_v42 = vadd.f32 %v3317_v27, %v1723_v6  ;;  %v1766_v10 = vadd.f32 %v3317_v27, %v1765_v44  ;;  %v1642_v8 = vpop.f32.mrf.mxu0  ;;  %v1681_v40 = vpop.f32.mrf.mxu1 }
 0x2ac   : > { %v1643_v23 = vadd.f32 %v3317_v27, %v1642_v8  ;;  %v1682_v7 = vadd.f32 %v3317_v27, %v1681_v40 }
 0x2ad   : > { %1843 = vst [vmem:[%s3327_s30 + $0x120] sm:$0xff] %v1724_v42 }
 0x2ae   : > { %1857 = vst [vmem:[%s3327_s30 + $0x190] sm:$0xff] %v1766_v10 }
 0x2af   : > { %1816 = vst [vmem:[%s3327_s30 + $0x48] sm:$0xff] %v1643_v23 }
 0x2b0   : > { %1829 = vst [vmem:[%s3327_s30 + $0xb0] sm:$0xff] %v1682_v7 }
 0x2b2   : > { %v1726_v3 = vpop.f32.mrf.mxu2  ;;  %v1768_v58 = vpop.f32.mrf.mxu3 }
 0x2b3   : > { %v1727_v39 = vadd.f32 %v3317_v27, %v1726_v3  ;;  %v1769_v62 = vadd.f32 %v3317_v27, %v1768_v58  ;;  %v1645_v51 = vpop.f32.mrf.mxu0  ;;  %v1684_v46 = vpop.f32.mrf.mxu1 }
 0x2b4   : > { %v1646_v59 = vadd.f32 %v3317_v27, %v1645_v51  ;;  %v1685_v32 = vadd.f32 %v3317_v27, %v1684_v46 }
 0x2b5   : > { %1844 = vst [vmem:[%s3327_s30 + $0x128] sm:$0xff] %v1727_v39 }
 0x2b6   : > { %1858 = vst [vmem:[%s3327_s30 + $0x198] sm:$0xff] %v1769_v62 }
 0x2b7   : > { %1817 = vst [vmem:[%s3327_s30 + $0x50] sm:$0xff] %v1646_v59 }
 0x2b8   : > { %1830 = vst [vmem:[%s3327_s30 + $0xb8] sm:$0xff] %v1685_v32 }
 0x2ba   : > { %v1729_v26 = vpop.f32.mrf.mxu2  ;;  %v1771_v13 = vpop.f32.mrf.mxu3 }
 0x2bb   : > { %v1730_v1 = vadd.f32 %v3317_v27, %v1729_v26  ;;  %v1772_v35 = vadd.f32 %v3317_v27, %v1771_v13  ;;  %v1648_v22 = vpop.f32.mrf.mxu0  ;;  %v1687_v45 = vpop.f32.mrf.mxu1 }
 0x2bc   : > { %v1649_v30 = vadd.f32 %v3317_v27, %v1648_v22  ;;  %v1688_v18 = vadd.f32 %v3317_v27, %v1687_v45 }
 0x2bd   : > { %1845 = vst [vmem:[%s3327_s30 + $0x130] sm:$0xff] %v1730_v1 }
 0x2be   : > { %1859 = vst [vmem:[%s3327_s30 + $0x1a0] sm:$0xff] %v1772_v35 }
 0x2bf   : > { %1818 = vst [vmem:[%s3327_s30 + $0x58] sm:$0xff] %v1649_v30 }
 0x2c0   : > { %1831 = vst [vmem:[%s3327_s30 + $0xc0] sm:$0xff] %v1688_v18 }
 0x2c2   : > { %v1732_v31 = vpop.f32.mrf.mxu2  ;;  %v1774_v19 = vpop.f32.mrf.mxu3 }
 0x2c3   : > { %v1733_v34 = vadd.f32 %v3317_v27, %v1732_v31  ;;  %v1775_v24 = vadd.f32 %v3317_v27, %v1774_v19  ;;  %v1651_v5 = vpop.f32.mrf.mxu0  ;;  %v1690_v21 = vpop.f32.mrf.mxu1 }
 0x2c4   : > { %v1652_v50 = vadd.f32 %v3317_v27, %v1651_v5  ;;  %v1691_v33 = vadd.f32 %v3317_v27, %v1690_v21 }
 0x2c5   : > { %1846 = vst [vmem:[%s3327_s30 + $0x138] sm:$0xff] %v1733_v34 }
 0x2c6   : > { %1860 = vst [vmem:[%s3327_s30 + $0x1a8] sm:$0xff] %v1775_v24 }
 0x2c7   : > { %1819 = vst [vmem:[%s3327_s30 + $0x60] sm:$0xff] %v1652_v50 }
 0x2c8   : > { %1832 = vst [vmem:[%s3327_s30 + $0xc8] sm:$0xff] %v1691_v33 }
 0x2ca   : > { %v1735_v17 = vpop.f32.mrf.mxu2  ;;  %v1777_v16 = vpop.f32.mrf.mxu3 }
 0x2cb   : > { %v1736_v47 = vadd.f32 %v3317_v27, %v1735_v17  ;;  %v1778_v60 = vadd.f32 %v3317_v27, %v1777_v16  ;;  %v1654_v54 = vpop.f32.mrf.mxu0  ;;  %v1693_v53 = vpop.f32.mrf.mxu1 }
 0x2cc   : > { %v1655_v9 = vadd.f32 %v3317_v27, %v1654_v54  ;;  %v1694_v38 = vadd.f32 %v3317_v27, %v1693_v53 }
 0x2cd   : > { %1847 = vst [vmem:[%s3327_s30 + $0x140] sm:$0xff] %v1736_v47 }
 0x2ce   : > { %1861 = vst [vmem:[%s3327_s30 + $0x1b0] sm:$0xff] %v1778_v60 }
 0x2cf   : > { %1820 = vst [vmem:[%s3327_s30 + $0x68] sm:$0xff] %v1655_v9 }
 0x2d0   : > { %1833 = vst [vmem:[%s3327_s30 + $0xd0] sm:$0xff] %v1694_v38 }
 0x2d2   : > { %v1738_v12 = vpop.f32.mrf.mxu2  ;;  %v1780_v11 = vpop.f32.mrf.mxu3 }
 0x2d3   : > { %v1739_v52 = vadd.f32 %v3317_v27, %v1738_v12  ;;  %v1781_v57 = vadd.f32 %v3317_v27, %v1780_v11  ;;  %v1696_v48 = vpop.f32.mrf.mxu1 }
 0x2d4   : > { %v1697_v15 = vadd.f32 %v3317_v27, %v1696_v48 }
 0x2d5   : > { %1848 = vst [vmem:[%s3327_s30 + $0x148] sm:$0xff] %v1739_v52 }
 0x2d6   : > { %1862 = vst [vmem:[%s3327_s30 + $0x1b8] sm:$0xff] %v1781_v57 }
 0x2d7   : > { %1834 = vst [vmem:[%s3327_s30 + $0xd8] sm:$0xff] %v1697_v15 }
 0x2da   : > { %v1741_v29 = vpop.f32.mrf.mxu2  ;;  %v1783_v37 = vpop.f32.mrf.mxu3 }
 0x2db   : > { %v1742_v43 = vadd.f32 %v3317_v27, %v1741_v29  ;;  %v1784_v14 = vadd.f32 %v3317_v27, %v1783_v37  ;;  %v1699_v2 = vpop.f32.mrf.mxu1 }
 0x2dc   : > { %v1700_v61 = vadd.f32 %v3317_v27, %v1699_v2 }
 0x2dd   : > { %1849 = vst [vmem:[%s3327_s30 + $0x150] sm:$0xff] %v1742_v43 }
 0x2de   : > { %1863 = vst [vmem:[%s3327_s30 + $0x1c0] sm:$0xff] %v1784_v14 }
 0x2df   : > { %1835 = vst [vmem:[%s3327_s30 + $0xe0] sm:$0xff] %v1700_v61 }
 0x2e2   : > { %v1744_v49 = vpop.f32.mrf.mxu2  ;;  %v1786_v41 = vpop.f32.mrf.mxu3 }
 0x2e3   : > { %v1745_v36 = vadd.f32 %v3317_v27, %v1744_v49  ;;  %v1787_v28 = vadd.f32 %v3317_v27, %v1786_v41  ;;  %v1702_v25 = vpop.f32.mrf.mxu1 }
 0x2e4   : > { %v1703_v0 = vadd.f32 %v3317_v27, %v1702_v25 }
 0x2e5   : > { %1850 = vst [vmem:[%s3327_s30 + $0x158] sm:$0xff] %v1745_v36 }
 0x2e6   : > { %1864 = vst [vmem:[%s3327_s30 + $0x1c8] sm:$0xff] %v1787_v28 }
 0x2e7   : > { %1836 = vst [vmem:[%s3327_s30 + $0xe8] sm:$0xff] %v1703_v0 }
 0x2ea   : > { %v1747_v4 = vpop.f32.mrf.mxu2  ;;  %v1789_v56 = vpop.f32.mrf.mxu3 }
 0x2eb   : > { %v1748_v63 = vadd.f32 %v3317_v27, %v1747_v4  ;;  %v1790_v55 = vadd.f32 %v3317_v27, %v1789_v56  ;;  %v1657_v20 = vpop.f32.mrf.mxu0 }
 0x2ec   : > { %v1658_v6 = vadd.f32 %v3317_v27, %v1657_v20 }
 0x2ed   : > { %1851 = vst [vmem:[%s3327_s30 + $0x160] sm:$0xff] %v1748_v63 }
 0x2ee   : > { %1865 = vst [vmem:[%s3327_s30 + $0x1d0] sm:$0xff] %v1790_v55 }
 0x2ef   : > { %1821 = vst [vmem:[%s3327_s30 + $0x70] sm:$0xff] %v1658_v6 }
 0x2f2   : > { %v1750_v44 = vpop.f32.mrf.mxu2  ;;  %v1792_v42 = vpop.f32.mrf.mxu3 }
 0x2f3   : > { %v1751_v10 = vadd.f32 %v3317_v27, %v1750_v44  ;;  %v1793_v8 = vadd.f32 %v3317_v27, %v1792_v42 }
 0x2f5   : > { %1852 = vst [vmem:[%s3327_s30 + $0x168] sm:$0xff] %v1751_v10 }
 0x2f6   : > { %1866 = vst [vmem:[%s3327_s30 + $0x1d8] sm:$0xff] %v1793_v8 }
 0x2fa   : > { %v1753_v40 = vpop.f32.mrf.mxu2  ;;  %v1795_v23 = vpop.f32.mrf.mxu3 }
 0x2fb   : > { %v1754_v7 = vadd.f32 %v3317_v27, %v1753_v40  ;;  %v1796_v3 = vadd.f32 %v3317_v27, %v1795_v23 }
 0x2fc   : > { %v1705_v58 = vpop.f32.mrf.mxu1 }
 0x2fd   : > { %1853 = vst [vmem:[%s3327_s30 + $0x170] sm:$0xff] %v1754_v7  ;;  %v1706_v39 = vadd.f32 %v3317_v27, %v1705_v58 }
 0x2fe   : > { %1867 = vst [vmem:[%s3327_s30 + $0x1e0] sm:$0xff] %v1796_v3 }
 0x2ff   : > { %1837 = vst [vmem:[%s3327_s30 + $0xf0] sm:$0xff] %v1706_v39 }
 0x302   : > { %v1798_v62 = vpop.f32.mrf.mxu3 }
 0x303   : > { %v1799_v51 = vadd.f32 %v3317_v27, %v1798_v62 }
 0x304   : > { %v1660_v46 = vpop.f32.mrf.mxu0 }
 0x305   : > { %1868 = vst [vmem:[%s3327_s30 + $0x1e8] sm:$0xff] %v1799_v51  ;;  %v1661_v59 = vadd.f32 %v3317_v27, %v1660_v46 }
 0x307   : > { %1822 = vst [vmem:[%s3327_s30 + $0x78] sm:$0xff] %v1661_v59 }
 0x30a   : > { %v1801_v32 = vpop.f32.mrf.mxu3 }
 0x30b   : > { %v1802_v26 = vadd.f32 %v3317_v27, %v1801_v32 }
 0x30d   : > { %1869 = vst [vmem:[%s3327_s30 + $0x1f0] sm:$0xff] %v1802_v26 }
 0x311   : > { %v1756_v13 = vpop.f32.mrf.mxu2 }
 0x312   : > { %v1757_v1 = vadd.f32 %v3317_v27, %v1756_v13  ;;  %v1804_v35 = vpop.f32.mrf.mxu3 }
 0x313   : > { %v1805_v22 = vadd.f32 %v3317_v27, %v1804_v35  ;;  %v1708_v45 = vpop.f32.mrf.mxu1 }
 0x314   : > { %1854 = vst [vmem:[%s3327_s30 + $0x178] sm:$0xff] %v1757_v1  ;;  %v1709_v30 = vadd.f32 %v3317_v27, %v1708_v45 }
 0x315   : > { %1870 = vst [vmem:[%s3327_s30 + $0x1f8] sm:$0xff] %v1805_v22 }
 0x316   : > { %1838 = vst [vmem:[%s3327_s30 + $0xf8] sm:$0xff] %v1709_v30 }
 0x317   : > { %2105 = shalt.err (!%p2102_p3)
}
 0x318   : > { %s2145_s17 = smov 128   ;;  %s2146_s26 = smov 8  }
 0x319   : > { %2010 = dma.vmem_to_hbm [thread:$0]  (%p2215_p5), %s1885_s11, 8192, %s1887_s12, %s1872_s22, %s2145_s17, %s2145_s17, %s2146_s26  }
 0x31a PF: > { %p2016_p4 = scmp.ge.s32.totalorder %s2140_s21, 2  ;;  %s1901_s30 = sand.u32 1, %s2128_s18  }
 0x31b   : > { %s1902_s6 = scalar_lea.sflag [#allocation3], %s1901_s30 }
 0x31c   : > { %p2013_p7 = pnand %p2016_p4, %p2219_p6 }
 0x31e   : > { %p2014_p8 = pneg %p2013_p7 }
 0x320   : > { %2123 = dma.done.wait (%p2014_p8), %s1902_s6, 8192  }
 0x321   : > { %2125 = vsyncadd (%p2014_p8), %s1902_s6, 4294959104  ;;  %p15_p9 = scmp.ge.s32.totalorder %s2202_s24, 6   ;;  %s3755_s18 = smov %s2132_s19 }
 0x322   : > { %s3756_s19 = smov %s2136_s20  ;;  %s3757_s20 = smov %s2213_s27 }
 0x323   : > { %s3758_s21 = smov %s2202_s24  ;;  %17 = sbr.rel (!%p15_p9) target bundleno = 3 (0x3), region = 75 }
 0x328   :  { %1908 = vsyncpa [#allocation3], 1 }
 0x329   :  { %1910 = vsyncpa [#allocation3 + $0x1], 1 }

</bundles_post_ra>
